<compile_context>
chip_gen: v7x
topology: tpu7x:2x2x1
jax: 0.10.0
libtpu: 0.0.40
codegen_flags: <defaults>
</compile_context>

<pallas_src>
import numpy as np

import jax
import jax.numpy as jnp
from jax.experimental import pallas as pl
from jax.experimental.pallas import tpu as pltpu

SUB = 8               # sublane count (f32 rows)
MAX_BATCH_TILE = 128  # rows per grid step


def _rup(x, m):
    return ((x + m - 1) // m) * m


# -----------------------------------------------------------------------------
# Fused forward kernel (one grid step = one batch tile, all layers fused).
# -----------------------------------------------------------------------------
def _make_dual_kernel(rec_scheme, predict_scheme, dims):
    d_u1, d_i1 = dims["d_u1"], dims["d_i1"]
    d_u2, d_i2 = dims["d_u2"], dims["d_i2"]
    d_h = dims["d_h"]
    n_common = 13

    def kernel(*refs):
        (u_ref, i_ref, b_ref,
         u_w1f, i_w1f,
         up_w2, us2_w, ip_w2, is2_w,
         uce_w, ucc_w, ice_w, icc_w) = refs[:n_common]
        rest = refs[n_common:]

        def bias(idx, n):
            # (1, n) f32 row of the packed bias stack (static slice).
            return b_ref[idx:idx + 1, 0:n]

        def mm(x, w_ref):
            # bf16 MXU matmul, f32 accumulation.
            return jnp.dot(x.astype(jnp.bfloat16), w_ref[...],
                           preferred_element_type=jnp.float32)

        def relu(y):
            return jnp.maximum(y, 0.0)

        def sigm(y):
            # exp -> EUP, reciprocal -> EUP (frees the VALU divide slot).
            return pl.reciprocal(1.0 + jnp.exp(-y), approx=True)

        u = u_ref[...]
        it = i_ref[...]

        # Stage 1: private-l1 and shared-s1 consume the same input -> one
        # fused (wider) matmul per side; slice the halves back in-register.
        hu = relu(mm(u, u_w1f) + bias(0, 2 * d_u1))
        hi = relu(mm(it, i_w1f) + bias(1, 2 * d_i1))
        h_up, h_us = hu[:, :d_u1], hu[:, d_u1:]
        h_ip, h_is = hi[:, :d_i1], hi[:, d_i1:]

        # Stage-2 encoders (private / shared).
        uep = relu(mm(h_up, up_w2) + bias(2, d_u2))
        ues = relu(mm(h_us, us2_w) + bias(3, d_u2))
        iep = relu(mm(h_ip, ip_w2) + bias(4, d_i2))
        ies = relu(mm(h_is, is2_w) + bias(5, d_i2))

        # Domain classifiers (ReverseLayerF is identity in the forward pass).
        ulab = sigm(mm(relu(mm(ues, uce_w) + bias(6, d_h)), ucc_w) + bias(7, 2))
        ilab = sigm(mm(relu(mm(ies, ice_w) + bias(8, d_h)), icc_w) + bias(9, 2))

        if rec_scheme == "share":
            ucode, icode = ues, ies
        elif rec_scheme == "private":
            ucode, icode = uep, iep
        else:  # "all"
            ucode, icode = ues + uep, ies + iep

        if predict_scheme == "recon":
            du_w1, du_w2, di_w1, di_w2 = rest[:4]
            (o_uep, o_iep, o_ues, o_ies, o_ulab, o_ilab, o_pu, o_pi) = rest[4:]
            pu = relu(mm(relu(mm(ucode, du_w1) + bias(10, d_u1)), du_w2)
                      + bias(11, dims["n_rec_u"]))
            pi = relu(mm(relu(mm(icode, di_w1) + bias(12, d_i1)), di_w2)
                      + bias(13, dims["n_rec_i"]))
            o_pu[...] = pu.astype(o_pu.dtype)
            o_pi[...] = pi.astype(o_pi.dtype)
        else:  # "MF"
            mu_w, mi_w = rest[:2]
            (o_uep, o_iep, o_ues, o_ies, o_ulab, o_ilab, o_rate) = rest[2:]
            mu = relu(mm(ucode, mu_w) + bias(10, d_h))
            mv = relu(mm(icode, mi_w) + bias(11, d_h))
            o_rate[...] = jnp.sum(mu * mv, axis=-1,
                                  keepdims=True).astype(o_rate.dtype)

        o_uep[...] = uep.astype(o_uep.dtype)
        o_iep[...] = iep.astype(o_iep.dtype)
        o_ues[...] = ues.astype(o_ues.dtype)
        o_ies[...] = ies.astype(o_ies.dtype)
        o_ulab[...] = ulab.astype(o_ulab.dtype)
        o_ilab[...] = ilab.astype(o_ilab.dtype)

    return kernel


# -----------------------------------------------------------------------------
# Parameters: canonical, UNPADDED, bf16 weights ([in, out]) + f32 zero biases.
# Matches torch init: weight ~ N(0, 0.01), bias = 0.
# -----------------------------------------------------------------------------
def _init_linear(key, n_in, n_out, std=0.01):
    w = (std * jax.random.normal(key, (n_in, n_out), jnp.float32)
         ).astype(jnp.bfloat16)
    b = jnp.zeros((n_out,), jnp.float32)
    return {"w": w, "b": b}


def init_dual_params(key, num_user_source, num_item_source, num_user_target,
                     num_item_target, num_dim_user_1, num_dim_item_1,
                     num_dim_user_2, num_dim_item_2, num_dim_hidden):
    keys = iter(jax.random.split(key, 64))

    def lin(a, b):
        return _init_linear(next(keys), a, b)

    def two(a, b, c):
        return {"l1": lin(a, b), "l2": lin(b, c)}

    return {
        "source_encoder_user_p": two(num_item_source, num_dim_user_1, num_dim_user_2),
        "source_encoder_item_p": two(num_user_source, num_dim_item_1, num_dim_item_2),
        "target_encoder_user_p": two(num_item_target, num_dim_user_1, num_dim_user_2),
        "target_encoder_item_p": two(num_user_target, num_dim_item_1, num_dim_item_2),
        "source_encoder_user_s": lin(num_item_source, num_dim_user_1),
        "target_encoder_user_s": lin(num_item_target, num_dim_user_1),
        "source_encoder_item_s": lin(num_user_source, num_dim_item_1),
        "target_encoder_item_s": lin(num_user_target, num_dim_item_1),
        "encoder_user_s": lin(num_dim_user_1, num_dim_user_2),
        "encoder_item_s": lin(num_dim_item_1, num_dim_item_2),
        "user_classifier": {"enc": lin(num_dim_user_2, num_dim_hidden),
                            "cls": lin(num_dim_hidden, 2)},
        "item_classifier": {"enc": lin(num_dim_item_2, num_dim_hidden),
                            "cls": lin(num_dim_hidden, 2)},
        "source_decoder_user": two(num_dim_user_2, num_dim_user_1, num_item_source),
        "source_decoder_item": two(num_dim_item_2, num_dim_item_1, num_user_source),
        "target_decoder_user": two(num_dim_user_2, num_dim_user_1, num_item_target),
        "target_decoder_item": two(num_dim_item_2, num_dim_item_1, num_user_target),
        "MF": {"user": lin(num_dim_user_2, num_dim_hidden),
               "item": lin(num_dim_item_2, num_dim_hidden)},
    }


# -----------------------------------------------------------------------------
# Forward wrapper: pack biases, fuse stage-1 weights, batch-tile, one kernel.
# -----------------------------------------------------------------------------
def dual_forward(params, user_input, item_input, p=0.0, source_scheme="target",
                 rec_scheme="all", predict_scheme="recon"):
    del p  # ReverseLayerF only changes gradients; forward is identity.

    if source_scheme not in ("source", "target"):
        raise ValueError(source_scheme)
    if rec_scheme not in ("share", "private", "all"):
        raise ValueError(rec_scheme)
    if predict_scheme not in ("recon", "MF"):
        raise ValueError(predict_scheme)

    pfx = source_scheme
    enc_u_p = params[f"{pfx}_encoder_user_p"]
    enc_i_p = params[f"{pfx}_encoder_item_p"]
    enc_u_s = params[f"{pfx}_encoder_user_s"]
    enc_i_s = params[f"{pfx}_encoder_item_s"]
    enc_u_s2 = params["encoder_user_s"]
    enc_i_s2 = params["encoder_item_s"]
    ucls = params["user_classifier"]
    icls = params["item_classifier"]
    dec_u = params[f"{pfx}_decoder_user"]
    dec_i = params[f"{pfx}_decoder_item"]

    Bu, Ku = user_input.shape
    Bi, Ki = item_input.shape
    assert Ku == enc_u_s["w"].shape[0] and Ki == enc_i_s["w"].shape[0]
    if predict_scheme == "MF":
        # element-wise user*item product requires matching TRUE batch sizes
        assert Bu == Bi, "MF prediction requires matching user/item batches"

    d_u1 = enc_u_s["w"].shape[1]
    d_i1 = enc_i_s["w"].shape[1]
    d_u2 = enc_u_s2["w"].shape[1]
    d_i2 = enc_i_s2["w"].shape[1]
    d_h = ucls["enc"]["w"].shape[1]

    # Batch tiling: pad only the batch, to the tile (a multiple of 8).
    B = max(Bu, Bi)
    bt = min(_rup(B, SUB), MAX_BATCH_TILE)
    B_p = _rup(B, bt)
    grid = (B_p // bt,)

    bf16, f32 = jnp.bfloat16, jnp.float32
    u_pad = jnp.zeros((B_p, Ku), bf16).at[:Bu].set(user_input.astype(bf16))
    i_pad = jnp.zeros((B_p, Ki), bf16).at[:Bi].set(item_input.astype(bf16))

    # Fused stage-1 weights: [private_l1 | shared_s1] share the same input.
    u_w1f = jnp.concatenate([enc_u_p["l1"]["w"], enc_u_s["w"]], axis=1)
    i_w1f = jnp.concatenate([enc_i_p["l1"]["w"], enc_i_s["w"]], axis=1)

    weights = [
        u_w1f, i_w1f,
        enc_u_p["l2"]["w"], enc_u_s2["w"], enc_i_p["l2"]["w"], enc_i_s2["w"],
        ucls["enc"]["w"], ucls["cls"]["w"], icls["enc"]["w"], icls["cls"]["w"],
    ]
    biases = [
        jnp.concatenate([enc_u_p["l1"]["b"], enc_u_s["b"]]),
        jnp.concatenate([enc_i_p["l1"]["b"], enc_i_s["b"]]),
        enc_u_p["l2"]["b"], enc_u_s2["b"], enc_i_p["l2"]["b"], enc_i_s2["b"],
        ucls["enc"]["b"], ucls["cls"]["b"], icls["enc"]["b"], icls["cls"]["b"],
    ]

    dims = dict(d_u1=d_u1, d_i1=d_i1, d_u2=d_u2, d_i2=d_i2, d_h=d_h)

    embed_out = (
        jax.ShapeDtypeStruct((B_p, d_u2), f32),   # user_embeds_p
        jax.ShapeDtypeStruct((B_p, d_i2), f32),   # item_embeds_p
        jax.ShapeDtypeStruct((B_p, d_u2), f32),   # user_embeds_s
        jax.ShapeDtypeStruct((B_p, d_i2), f32),   # item_embeds_s
        jax.ShapeDtypeStruct((B_p, 2), f32),      # user_label
        jax.ShapeDtypeStruct((B_p, 2), f32),      # item_label
    )

    if predict_scheme == "recon":
        n_rec_u = dec_u["l2"]["w"].shape[1]
        n_rec_i = dec_i["l2"]["w"].shape[1]
        dims["n_rec_u"], dims["n_rec_i"] = n_rec_u, n_rec_i
        weights += [dec_u["l1"]["w"], dec_u["l2"]["w"],
                    dec_i["l1"]["w"], dec_i["l2"]["w"]]
        biases += [dec_u["l1"]["b"], dec_u["l2"]["b"],
                   dec_i["l1"]["b"], dec_i["l2"]["b"]]
        out_shape = embed_out + (
            jax.ShapeDtypeStruct((B_p, n_rec_u), f32),
            jax.ShapeDtypeStruct((B_p, n_rec_i), f32),
        )
    else:  # "MF"
        weights += [params["MF"]["user"]["w"], params["MF"]["item"]["w"]]
        biases += [params["MF"]["user"]["b"], params["MF"]["item"]["b"]]
        out_shape = embed_out + (jax.ShapeDtypeStruct((B_p, 1), f32),)

    # Pack all biases into one stacked (n_bias, max_dim) f32 array -> one DMA.
    max_w = max(int(b.shape[0]) for b in biases)
    b_stack = jnp.stack([jnp.pad(b, (0, max_w - b.shape[0])) for b in biases])

    # Inputs / outputs tiled over batch; weights + bias stack whole-array and
    # resident across grid steps (constant index_map => fetched once).
    def resident(arr):
        return pl.BlockSpec(arr.shape, lambda b: (0,) * arr.ndim)

    in_specs = (
        [pl.BlockSpec((bt, Ku), lambda b: (b, 0)),
         pl.BlockSpec((bt, Ki), lambda b: (b, 0)),
         resident(b_stack)]
        + [resident(w) for w in weights]
    )
    out_specs = tuple(
        pl.BlockSpec((bt, s.shape[1]), lambda b: (b, 0)) for s in out_shape)

    outs = pl.pallas_call(
        _make_dual_kernel(rec_scheme, predict_scheme, dims),
        grid=grid,
        out_shape=out_shape,
        in_specs=in_specs,
        out_specs=out_specs,
        compiler_params=pltpu.CompilerParams(
            dimension_semantics=("parallel",)),
    )(u_pad, i_pad, b_stack, *weights)

    # Slice the true (unpadded) batch back out.
    uep, iep, ues, ies, ulab, ilab = outs[:6]
    embeds = [uep[:Bu], iep[:Bi], ues[:Bu], ies[:Bi]]
    user_label = ulab[:Bu]
    item_label = ilab[:Bi]

    if predict_scheme == "recon":
        rating_predict = [outs[6][:Bu], outs[7][:Bi]]
    else:
        rating_predict = outs[6][:Bu, 0]

    return embeds, [user_label, item_label, rating_predict]


# -----------------------------------------------------------------------------
# Pure-JAX reference of the PyTorch forward (correctness check only).
# -----------------------------------------------------------------------------
def _ref_lin(lin, x, act="relu"):
    y = x @ lin["w"].astype(jnp.float32) + lin["b"]
    if act == "relu":
        return jnp.maximum(y, 0.0)
    if act == "sigmoid":
        return 1.0 / (1.0 + jnp.exp(-y))
    return y


def _ref_two(two, x):
    return _ref_lin(two["l2"], _ref_lin(two["l1"], x))


def dual_forward_ref(params, user_input, item_input, source_scheme="target",
                     rec_scheme="all", predict_scheme="recon"):
    pfx = source_scheme
    uep = _ref_two(params[f"{pfx}_encoder_user_p"], user_input)
    iep = _ref_two(params[f"{pfx}_encoder_item_p"], item_input)
    ues = _ref_lin(params["encoder_user_s"],
                   _ref_lin(params[f"{pfx}_encoder_user_s"], user_input))
    ies = _ref_lin(params["encoder_item_s"],
                   _ref_lin(params[f"{pfx}_encoder_item_s"], item_input))
    ulab = _ref_lin(params["user_classifier"]["cls"],
                    _ref_lin(params["user_classifier"]["enc"], ues), act="sigmoid")
    ilab = _ref_lin(params["item_classifier"]["cls"],
                    _ref_lin(params["item_classifier"]["enc"], ies), act="sigmoid")
    if rec_scheme == "share":
        ucode, icode = ues, ies
    elif rec_scheme == "private":
        ucode, icode = uep, iep
    else:
        ucode, icode = ues + uep, ies + iep
    if predict_scheme == "MF":
        mu = _ref_lin(params["MF"]["user"], ucode)
        mv = _ref_lin(params["MF"]["item"], icode)
        rating = jnp.sum(mu * mv, axis=-1)
    else:
        du, di = params[f"{pfx}_decoder_user"], params[f"{pfx}_decoder_item"]
        rating = [_ref_two(du, ucode), _ref_two(di, icode)]
    return [uep, iep, ues, ies], [ulab, ilab, rating]


# -----------------------------------------------------------------------------
# Main
# -----------------------------------------------------------------------------
if __name__ == "__main__":
    num_user_source = 24
    num_item_source = 20
    num_user_target = 16
    num_item_target = 12
    num_dim_user_1 = 32
    num_dim_item_1 = 32
    num_dim_user_2 = 16
    num_dim_item_2 = 16
    num_dim_hidden = 8
    batch_users = 4
    batch_items = 4

    key = jax.random.PRNGKey(0)
    k_params, k_u, k_i = jax.random.split(key, 3)

    params = init_dual_params(
        k_params, num_user_source, num_item_source, num_user_target,
        num_item_target, num_dim_user_1, num_dim_item_1,
        num_dim_user_2, num_dim_item_2, num_dim_hidden)

    # scheme 'target': user rows indexed by target items, item rows by target
    # users (matching the torch encoder input dims).
    user_input = jax.random.normal(k_u, (batch_users, num_item_target), jnp.float32)
    item_input = jax.random.normal(k_i, (batch_items, num_user_target), jnp.float32)

    # Both forward variants (recon + MF) inside ONE jit region so the input
    # padding / packing ops and launches are shared.
    @jax.jit
    def run_both(prm, u, i):
        recon = dual_forward(prm, u, i, p=0.0, source_scheme="target",
                             rec_scheme="all", predict_scheme="recon")
        mf = dual_forward(prm, u, i, p=0.5, source_scheme="target",
                          rec_scheme="all", predict_scheme="MF")
        return recon, mf

    (embeds, results), (_, results_mf) = run_both(params, user_input, item_input)
    jax.block_until_ready((embeds, results, results_mf))

    # Correctness check vs. pure-JAX reference of the PyTorch forward.
    ref_embeds, ref_results = dual_forward_ref(
        params, user_input, item_input,
        source_scheme="target", rec_scheme="all", predict_scheme="recon")
    _, ref_results_mf = dual_forward_ref(
        params, user_input, item_input,
        source_scheme="target", rec_scheme="all", predict_scheme="MF")

    got = embeds + [results[0], results[1]] + results[2] + [results_mf[2]]
    ref = ref_embeds + [ref_results[0], ref_results[1]] + ref_results[2] + [ref_results_mf[2]]
    for a, b in zip(got, ref):
        np.testing.assert_allclose(np.asarray(a), np.asarray(b),
                                   rtol=5e-2, atol=5e-4)

    print("KERNEL_OK")
</pallas_src>

<mosaic_0001>
module attributes {stable_mosaic.version = 11 : i64} {
  func.func @kernel(%arg0: i32, %arg1: memref<8x12xbf16, #tpu.memory_space<vmem>>, %arg2: memref<8x16xbf16, #tpu.memory_space<vmem>>, %arg3: memref<14x64xf32, #tpu.memory_space<vmem>>, %arg4: memref<12x64xbf16, #tpu.memory_space<vmem>>, %arg5: memref<16x64xbf16, #tpu.memory_space<vmem>>, %arg6: memref<32x16xbf16, #tpu.memory_space<vmem>>, %arg7: memref<32x16xbf16, #tpu.memory_space<vmem>>, %arg8: memref<32x16xbf16, #tpu.memory_space<vmem>>, %arg9: memref<32x16xbf16, #tpu.memory_space<vmem>>, %arg10: memref<16x8xbf16, #tpu.memory_space<vmem>>, %arg11: memref<8x2xbf16, #tpu.memory_space<vmem>>, %arg12: memref<16x8xbf16, #tpu.memory_space<vmem>>, %arg13: memref<8x2xbf16, #tpu.memory_space<vmem>>, %arg14: memref<16x32xbf16, #tpu.memory_space<vmem>>, %arg15: memref<32x12xbf16, #tpu.memory_space<vmem>>, %arg16: memref<16x32xbf16, #tpu.memory_space<vmem>>, %arg17: memref<32x16xbf16, #tpu.memory_space<vmem>>, %arg18: memref<8x16xf32, #tpu.memory_space<vmem>>, %arg19: memref<8x16xf32, #tpu.memory_space<vmem>>, %arg20: memref<8x16xf32, #tpu.memory_space<vmem>>, %arg21: memref<8x16xf32, #tpu.memory_space<vmem>>, %arg22: memref<8x2xf32, #tpu.memory_space<vmem>>, %arg23: memref<8x2xf32, #tpu.memory_space<vmem>>, %arg24: memref<8x12xf32, #tpu.memory_space<vmem>>, %arg25: memref<8x16xf32, #tpu.memory_space<vmem>>) attributes {dimension_semantics = [#tpu.dimension_semantics<parallel>], iteration_bounds = array<i64: 1>, scalar_prefetch = 0 : i64, scratch_operands = 0 : i64, tpu.core_type = #tpu.core_type<tc>, window_params = [{transform_indices = @transform_0, window_bounds = array<i64: 8, 12>}, {transform_indices = @transform_1, window_bounds = array<i64: 8, 16>}, {pipeline_mode = #tpu.pipeline_mode<synchronous>, transform_indices = @transform_2, window_bounds = array<i64: 14, 64>}, {pipeline_mode = #tpu.pipeline_mode<synchronous>, transform_indices = @transform_3, window_bounds = array<i64: 12, 64>}, {pipeline_mode = #tpu.pipeline_mode<synchronous>, transform_indices = @transform_4, window_bounds = array<i64: 16, 64>}, {pipeline_mode = #tpu.pipeline_mode<synchronous>, transform_indices = @transform_5, window_bounds = array<i64: 32, 16>}, {pipeline_mode = #tpu.pipeline_mode<synchronous>, transform_indices = @transform_6, window_bounds = array<i64: 32, 16>}, {pipeline_mode = #tpu.pipeline_mode<synchronous>, transform_indices = @transform_7, window_bounds = array<i64: 32, 16>}, {pipeline_mode = #tpu.pipeline_mode<synchronous>, transform_indices = @transform_8, window_bounds = array<i64: 32, 16>}, {pipeline_mode = #tpu.pipeline_mode<synchronous>, transform_indices = @transform_9, window_bounds = array<i64: 16, 8>}, {pipeline_mode = #tpu.pipeline_mode<synchronous>, transform_indices = @transform_10, window_bounds = array<i64: 8, 2>}, {pipeline_mode = #tpu.pipeline_mode<synchronous>, transform_indices = @transform_11, window_bounds = array<i64: 16, 8>}, {pipeline_mode = #tpu.pipeline_mode<synchronous>, transform_indices = @transform_12, window_bounds = array<i64: 8, 2>}, {pipeline_mode = #tpu.pipeline_mode<synchronous>, transform_indices = @transform_13, window_bounds = array<i64: 16, 32>}, {pipeline_mode = #tpu.pipeline_mode<synchronous>, transform_indices = @transform_14, window_bounds = array<i64: 32, 12>}, {pipeline_mode = #tpu.pipeline_mode<synchronous>, transform_indices = @transform_15, window_bounds = array<i64: 16, 32>}, {pipeline_mode = #tpu.pipeline_mode<synchronous>, transform_indices = @transform_16, window_bounds = array<i64: 32, 16>}, {transform_indices = @transform_17, window_bounds = array<i64: 8, 16>}, {transform_indices = @transform_18, window_bounds = array<i64: 8, 16>}, {transform_indices = @transform_19, window_bounds = array<i64: 8, 16>}, {transform_indices = @transform_20, window_bounds = array<i64: 8, 16>}, {transform_indices = @transform_21, window_bounds = array<i64: 8, 2>}, {transform_indices = @transform_22, window_bounds = array<i64: 8, 2>}, {transform_indices = @transform_23, window_bounds = array<i64: 8, 12>}, {transform_indices = @transform_24, window_bounds = array<i64: 8, 16>}]} {
    %c0 = arith.constant 0 : index
    %c0_0 = arith.constant 0 : index
    %0 = vector.load %arg1[%c0, %c0_0] : memref<8x12xbf16, #tpu.memory_space<vmem>>, vector<8x12xbf16>
    %c0_1 = arith.constant 0 : index
    %c0_2 = arith.constant 0 : index
    %1 = vector.load %arg2[%c0_1, %c0_2] : memref<8x16xbf16, #tpu.memory_space<vmem>>, vector<8x16xbf16>
    %c0_3 = arith.constant 0 : index
    %c0_4 = arith.constant 0 : index
    %2 = vector.load %arg4[%c0_3, %c0_4] : memref<12x64xbf16, #tpu.memory_space<vmem>>, vector<12x64xbf16>
    %cst = arith.constant dense<0.000000e+00> : vector<8x64xf32>
    %3 = tpu.matmul %0, %2, %cst {dimension_numbers = #tpu.dot_dimension_numbers<[1], [0], [0], [1], [0, 0, 1, 1], [], []>} : vector<8x12xbf16>, vector<12x64xbf16>, vector<8x64xf32> -> vector<8x64xf32>
    %c0_5 = arith.constant 0 : index
    %c0_6 = arith.constant 0 : index
    %4 = vector.load %arg3[%c0_5, %c0_6] : memref<14x64xf32, #tpu.memory_space<vmem>>, vector<1x64xf32>
    %5 = vector.broadcast %4 : vector<1x64xf32> to vector<8x64xf32>
    %6 = arith.addf %3, %5 : vector<8x64xf32>
    %cst_7 = arith.constant 0.000000e+00 : f32
    %7 = vector.broadcast %cst_7 : f32 to vector<8x64xf32>
    %8 = arith.maximumf %6, %7 : vector<8x64xf32>
    %c0_8 = arith.constant 0 : index
    %c0_9 = arith.constant 0 : index
    %9 = vector.load %arg5[%c0_8, %c0_9] : memref<16x64xbf16, #tpu.memory_space<vmem>>, vector<16x64xbf16>
    %cst_10 = arith.constant dense<0.000000e+00> : vector<8x64xf32>
    %10 = tpu.matmul %1, %9, %cst_10 {dimension_numbers = #tpu.dot_dimension_numbers<[1], [0], [0], [1], [0, 0, 1, 1], [], []>} : vector<8x16xbf16>, vector<16x64xbf16>, vector<8x64xf32> -> vector<8x64xf32>
    %c1 = arith.constant 1 : index
    %c0_11 = arith.constant 0 : index
    %11 = vector.load %arg3[%c1, %c0_11] : memref<14x64xf32, #tpu.memory_space<vmem>>, vector<1x64xf32>
    %12 = vector.broadcast %11 : vector<1x64xf32> to vector<8x64xf32>
    %13 = arith.addf %10, %12 : vector<8x64xf32>
    %cst_12 = arith.constant 0.000000e+00 : f32
    %14 = vector.broadcast %cst_12 : f32 to vector<8x64xf32>
    %15 = arith.maximumf %13, %14 : vector<8x64xf32>
    %16 = vector.extract_strided_slice %8 {offsets = [0, 0], sizes = [8, 32], strides = [1, 1]} : vector<8x64xf32> to vector<8x32xf32>
    %17 = vector.extract_strided_slice %8 {offsets = [0, 32], sizes = [8, 32], strides = [1, 1]} : vector<8x64xf32> to vector<8x32xf32>
    %18 = vector.extract_strided_slice %15 {offsets = [0, 0], sizes = [8, 32], strides = [1, 1]} : vector<8x64xf32> to vector<8x32xf32>
    %19 = vector.extract_strided_slice %15 {offsets = [0, 32], sizes = [8, 32], strides = [1, 1]} : vector<8x64xf32> to vector<8x32xf32>
    %20 = arith.truncf %16 : vector<8x32xf32> to vector<8x32xbf16>
    %c0_13 = arith.constant 0 : index
    %c0_14 = arith.constant 0 : index
    %21 = vector.load %arg6[%c0_13, %c0_14] : memref<32x16xbf16, #tpu.memory_space<vmem>>, vector<32x16xbf16>
    %cst_15 = arith.constant dense<0.000000e+00> : vector<8x16xf32>
    %22 = tpu.matmul %20, %21, %cst_15 {dimension_numbers = #tpu.dot_dimension_numbers<[1], [0], [0], [1], [0, 0, 1, 1], [], []>} : vector<8x32xbf16>, vector<32x16xbf16>, vector<8x16xf32> -> vector<8x16xf32>
    %c2 = arith.constant 2 : index
    %c0_16 = arith.constant 0 : index
    %23 = vector.load %arg3[%c2, %c0_16] : memref<14x64xf32, #tpu.memory_space<vmem>>, vector<1x16xf32>
    %24 = vector.broadcast %23 : vector<1x16xf32> to vector<8x16xf32>
    %25 = arith.addf %22, %24 : vector<8x16xf32>
    %cst_17 = arith.constant 0.000000e+00 : f32
    %26 = vector.broadcast %cst_17 : f32 to vector<8x16xf32>
    %27 = arith.maximumf %25, %26 : vector<8x16xf32>
    %28 = arith.truncf %17 : vector<8x32xf32> to vector<8x32xbf16>
    %c0_18 = arith.constant 0 : index
    %c0_19 = arith.constant 0 : index
    %29 = vector.load %arg7[%c0_18, %c0_19] : memref<32x16xbf16, #tpu.memory_space<vmem>>, vector<32x16xbf16>
    %cst_20 = arith.constant dense<0.000000e+00> : vector<8x16xf32>
    %30 = tpu.matmul %28, %29, %cst_20 {dimension_numbers = #tpu.dot_dimension_numbers<[1], [0], [0], [1], [0, 0, 1, 1], [], []>} : vector<8x32xbf16>, vector<32x16xbf16>, vector<8x16xf32> -> vector<8x16xf32>
    %c3 = arith.constant 3 : index
    %c0_21 = arith.constant 0 : index
    %31 = vector.load %arg3[%c3, %c0_21] : memref<14x64xf32, #tpu.memory_space<vmem>>, vector<1x16xf32>
    %32 = vector.broadcast %31 : vector<1x16xf32> to vector<8x16xf32>
    %33 = arith.addf %30, %32 : vector<8x16xf32>
    %cst_22 = arith.constant 0.000000e+00 : f32
    %34 = vector.broadcast %cst_22 : f32 to vector<8x16xf32>
    %35 = arith.maximumf %33, %34 : vector<8x16xf32>
    %36 = arith.truncf %18 : vector<8x32xf32> to vector<8x32xbf16>
    %c0_23 = arith.constant 0 : index
    %c0_24 = arith.constant 0 : index
    %37 = vector.load %arg8[%c0_23, %c0_24] : memref<32x16xbf16, #tpu.memory_space<vmem>>, vector<32x16xbf16>
    %cst_25 = arith.constant dense<0.000000e+00> : vector<8x16xf32>
    %38 = tpu.matmul %36, %37, %cst_25 {dimension_numbers = #tpu.dot_dimension_numbers<[1], [0], [0], [1], [0, 0, 1, 1], [], []>} : vector<8x32xbf16>, vector<32x16xbf16>, vector<8x16xf32> -> vector<8x16xf32>
    %c4 = arith.constant 4 : index
    %c0_26 = arith.constant 0 : index
    %39 = vector.load %arg3[%c4, %c0_26] : memref<14x64xf32, #tpu.memory_space<vmem>>, vector<1x16xf32>
    %40 = vector.broadcast %39 : vector<1x16xf32> to vector<8x16xf32>
    %41 = arith.addf %38, %40 : vector<8x16xf32>
    %cst_27 = arith.constant 0.000000e+00 : f32
    %42 = vector.broadcast %cst_27 : f32 to vector<8x16xf32>
    %43 = arith.maximumf %41, %42 : vector<8x16xf32>
    %44 = arith.truncf %19 : vector<8x32xf32> to vector<8x32xbf16>
    %c0_28 = arith.constant 0 : index
    %c0_29 = arith.constant 0 : index
    %45 = vector.load %arg9[%c0_28, %c0_29] : memref<32x16xbf16, #tpu.memory_space<vmem>>, vector<32x16xbf16>
    %cst_30 = arith.constant dense<0.000000e+00> : vector<8x16xf32>
    %46 = tpu.matmul %44, %45, %cst_30 {dimension_numbers = #tpu.dot_dimension_numbers<[1], [0], [0], [1], [0, 0, 1, 1], [], []>} : vector<8x32xbf16>, vector<32x16xbf16>, vector<8x16xf32> -> vector<8x16xf32>
    %c5 = arith.constant 5 : index
    %c0_31 = arith.constant 0 : index
    %47 = vector.load %arg3[%c5, %c0_31] : memref<14x64xf32, #tpu.memory_space<vmem>>, vector<1x16xf32>
    %48 = vector.broadcast %47 : vector<1x16xf32> to vector<8x16xf32>
    %49 = arith.addf %46, %48 : vector<8x16xf32>
    %cst_32 = arith.constant 0.000000e+00 : f32
    %50 = vector.broadcast %cst_32 : f32 to vector<8x16xf32>
    %51 = arith.maximumf %49, %50 : vector<8x16xf32>
    %52 = arith.truncf %35 : vector<8x16xf32> to vector<8x16xbf16>
    %c0_33 = arith.constant 0 : index
    %c0_34 = arith.constant 0 : index
    %53 = vector.load %arg10[%c0_33, %c0_34] : memref<16x8xbf16, #tpu.memory_space<vmem>>, vector<16x8xbf16>
    %cst_35 = arith.constant dense<0.000000e+00> : vector<8x8xf32>
    %54 = tpu.matmul %52, %53, %cst_35 {dimension_numbers = #tpu.dot_dimension_numbers<[1], [0], [0], [1], [0, 0, 1, 1], [], []>} : vector<8x16xbf16>, vector<16x8xbf16>, vector<8x8xf32> -> vector<8x8xf32>
    %c6 = arith.constant 6 : index
    %c0_36 = arith.constant 0 : index
    %55 = vector.load %arg3[%c6, %c0_36] : memref<14x64xf32, #tpu.memory_space<vmem>>, vector<1x8xf32>
    %56 = vector.broadcast %55 : vector<1x8xf32> to vector<8x8xf32>
    %57 = arith.addf %54, %56 : vector<8x8xf32>
    %cst_37 = arith.constant 0.000000e+00 : f32
    %58 = vector.broadcast %cst_37 : f32 to vector<8x8xf32>
    %59 = arith.maximumf %57, %58 : vector<8x8xf32>
    %60 = arith.truncf %59 : vector<8x8xf32> to vector<8x8xbf16>
    %c0_38 = arith.constant 0 : index
    %c0_39 = arith.constant 0 : index
    %61 = vector.load %arg11[%c0_38, %c0_39] : memref<8x2xbf16, #tpu.memory_space<vmem>>, vector<8x2xbf16>
    %cst_40 = arith.constant dense<0.000000e+00> : vector<8x2xf32>
    %62 = tpu.matmul %60, %61, %cst_40 {dimension_numbers = #tpu.dot_dimension_numbers<[1], [0], [0], [1], [0, 0, 1, 1], [], []>} : vector<8x8xbf16>, vector<8x2xbf16>, vector<8x2xf32> -> vector<8x2xf32>
    %c7 = arith.constant 7 : index
    %c0_41 = arith.constant 0 : index
    %63 = vector.load %arg3[%c7, %c0_41] : memref<14x64xf32, #tpu.memory_space<vmem>>, vector<1x2xf32>
    %64 = vector.broadcast %63 : vector<1x2xf32> to vector<8x2xf32>
    %65 = arith.addf %62, %64 : vector<8x2xf32>
    %cst_42 = arith.constant 0.000000e+00 : f32
    %66 = vector.broadcast %cst_42 : f32 to vector<8x2xf32>
    %67 = arith.subf %66, %65 : vector<8x2xf32>
    %68 = math.exp %67 : vector<8x2xf32>
    %cst_43 = arith.constant 1.000000e+00 : f32
    %69 = vector.broadcast %cst_43 : f32 to vector<8x2xf32>
    %70 = arith.addf %69, %68 : vector<8x2xf32>
    %71 = tpu.reciprocal %70 {approx = true} : vector<8x2xf32> -> vector<8x2xf32>
    %72 = arith.truncf %51 : vector<8x16xf32> to vector<8x16xbf16>
    %c0_44 = arith.constant 0 : index
    %c0_45 = arith.constant 0 : index
    %73 = vector.load %arg12[%c0_44, %c0_45] : memref<16x8xbf16, #tpu.memory_space<vmem>>, vector<16x8xbf16>
    %cst_46 = arith.constant dense<0.000000e+00> : vector<8x8xf32>
    %74 = tpu.matmul %72, %73, %cst_46 {dimension_numbers = #tpu.dot_dimension_numbers<[1], [0], [0], [1], [0, 0, 1, 1], [], []>} : vector<8x16xbf16>, vector<16x8xbf16>, vector<8x8xf32> -> vector<8x8xf32>
    %c8 = arith.constant 8 : index
    %c0_47 = arith.constant 0 : index
    %75 = vector.load %arg3[%c8, %c0_47] : memref<14x64xf32, #tpu.memory_space<vmem>>, vector<1x8xf32>
    %76 = vector.broadcast %75 : vector<1x8xf32> to vector<8x8xf32>
    %77 = arith.addf %74, %76 : vector<8x8xf32>
    %cst_48 = arith.constant 0.000000e+00 : f32
    %78 = vector.broadcast %cst_48 : f32 to vector<8x8xf32>
    %79 = arith.maximumf %77, %78 : vector<8x8xf32>
    %80 = arith.truncf %79 : vector<8x8xf32> to vector<8x8xbf16>
    %c0_49 = arith.constant 0 : index
    %c0_50 = arith.constant 0 : index
    %81 = vector.load %arg13[%c0_49, %c0_50] : memref<8x2xbf16, #tpu.memory_space<vmem>>, vector<8x2xbf16>
    %cst_51 = arith.constant dense<0.000000e+00> : vector<8x2xf32>
    %82 = tpu.matmul %80, %81, %cst_51 {dimension_numbers = #tpu.dot_dimension_numbers<[1], [0], [0], [1], [0, 0, 1, 1], [], []>} : vector<8x8xbf16>, vector<8x2xbf16>, vector<8x2xf32> -> vector<8x2xf32>
    %c9 = arith.constant 9 : index
    %c0_52 = arith.constant 0 : index
    %83 = vector.load %arg3[%c9, %c0_52] : memref<14x64xf32, #tpu.memory_space<vmem>>, vector<1x2xf32>
    %84 = vector.broadcast %83 : vector<1x2xf32> to vector<8x2xf32>
    %85 = arith.addf %82, %84 : vector<8x2xf32>
    %cst_53 = arith.constant 0.000000e+00 : f32
    %86 = vector.broadcast %cst_53 : f32 to vector<8x2xf32>
    %87 = arith.subf %86, %85 : vector<8x2xf32>
    %88 = math.exp %87 : vector<8x2xf32>
    %cst_54 = arith.constant 1.000000e+00 : f32
    %89 = vector.broadcast %cst_54 : f32 to vector<8x2xf32>
    %90 = arith.addf %89, %88 : vector<8x2xf32>
    %91 = tpu.reciprocal %90 {approx = true} : vector<8x2xf32> -> vector<8x2xf32>
    %92 = arith.addf %35, %27 : vector<8x16xf32>
    %93 = arith.addf %51, %43 : vector<8x16xf32>
    %94 = arith.truncf %92 : vector<8x16xf32> to vector<8x16xbf16>
    %c0_55 = arith.constant 0 : index
    %c0_56 = arith.constant 0 : index
    %95 = vector.load %arg14[%c0_55, %c0_56] : memref<16x32xbf16, #tpu.memory_space<vmem>>, vector<16x32xbf16>
    %cst_57 = arith.constant dense<0.000000e+00> : vector<8x32xf32>
    %96 = tpu.matmul %94, %95, %cst_57 {dimension_numbers = #tpu.dot_dimension_numbers<[1], [0], [0], [1], [0, 0, 1, 1], [], []>} : vector<8x16xbf16>, vector<16x32xbf16>, vector<8x32xf32> -> vector<8x32xf32>
    %c10 = arith.constant 10 : index
    %c0_58 = arith.constant 0 : index
    %97 = vector.load %arg3[%c10, %c0_58] : memref<14x64xf32, #tpu.memory_space<vmem>>, vector<1x32xf32>
    %98 = vector.broadcast %97 : vector<1x32xf32> to vector<8x32xf32>
    %99 = arith.addf %96, %98 : vector<8x32xf32>
    %cst_59 = arith.constant 0.000000e+00 : f32
    %100 = vector.broadcast %cst_59 : f32 to vector<8x32xf32>
    %101 = arith.maximumf %99, %100 : vector<8x32xf32>
    %102 = arith.truncf %101 : vector<8x32xf32> to vector<8x32xbf16>
    %c0_60 = arith.constant 0 : index
    %c0_61 = arith.constant 0 : index
    %103 = vector.load %arg15[%c0_60, %c0_61] : memref<32x12xbf16, #tpu.memory_space<vmem>>, vector<32x12xbf16>
    %cst_62 = arith.constant dense<0.000000e+00> : vector<8x12xf32>
    %104 = tpu.matmul %102, %103, %cst_62 {dimension_numbers = #tpu.dot_dimension_numbers<[1], [0], [0], [1], [0, 0, 1, 1], [], []>} : vector<8x32xbf16>, vector<32x12xbf16>, vector<8x12xf32> -> vector<8x12xf32>
    %c11 = arith.constant 11 : index
    %c0_63 = arith.constant 0 : index
    %105 = vector.load %arg3[%c11, %c0_63] : memref<14x64xf32, #tpu.memory_space<vmem>>, vector<1x12xf32>
    %106 = vector.broadcast %105 : vector<1x12xf32> to vector<8x12xf32>
    %107 = arith.addf %104, %106 : vector<8x12xf32>
    %cst_64 = arith.constant 0.000000e+00 : f32
    %108 = vector.broadcast %cst_64 : f32 to vector<8x12xf32>
    %109 = arith.maximumf %107, %108 : vector<8x12xf32>
    %110 = arith.truncf %93 : vector<8x16xf32> to vector<8x16xbf16>
    %c0_65 = arith.constant 0 : index
    %c0_66 = arith.constant 0 : index
    %111 = vector.load %arg16[%c0_65, %c0_66] : memref<16x32xbf16, #tpu.memory_space<vmem>>, vector<16x32xbf16>
    %cst_67 = arith.constant dense<0.000000e+00> : vector<8x32xf32>
    %112 = tpu.matmul %110, %111, %cst_67 {dimension_numbers = #tpu.dot_dimension_numbers<[1], [0], [0], [1], [0, 0, 1, 1], [], []>} : vector<8x16xbf16>, vector<16x32xbf16>, vector<8x32xf32> -> vector<8x32xf32>
    %c12 = arith.constant 12 : index
    %c0_68 = arith.constant 0 : index
    %113 = vector.load %arg3[%c12, %c0_68] : memref<14x64xf32, #tpu.memory_space<vmem>>, vector<1x32xf32>
    %114 = vector.broadcast %113 : vector<1x32xf32> to vector<8x32xf32>
    %115 = arith.addf %112, %114 : vector<8x32xf32>
    %cst_69 = arith.constant 0.000000e+00 : f32
    %116 = vector.broadcast %cst_69 : f32 to vector<8x32xf32>
    %117 = arith.maximumf %115, %116 : vector<8x32xf32>
    %118 = arith.truncf %117 : vector<8x32xf32> to vector<8x32xbf16>
    %c0_70 = arith.constant 0 : index
    %c0_71 = arith.constant 0 : index
    %119 = vector.load %arg17[%c0_70, %c0_71] : memref<32x16xbf16, #tpu.memory_space<vmem>>, vector<32x16xbf16>
    %cst_72 = arith.constant dense<0.000000e+00> : vector<8x16xf32>
    %120 = tpu.matmul %118, %119, %cst_72 {dimension_numbers = #tpu.dot_dimension_numbers<[1], [0], [0], [1], [0, 0, 1, 1], [], []>} : vector<8x32xbf16>, vector<32x16xbf16>, vector<8x16xf32> -> vector<8x16xf32>
    %c13 = arith.constant 13 : index
    %c0_73 = arith.constant 0 : index
    %121 = vector.load %arg3[%c13, %c0_73] : memref<14x64xf32, #tpu.memory_space<vmem>>, vector<1x16xf32>
    %122 = vector.broadcast %121 : vector<1x16xf32> to vector<8x16xf32>
    %123 = arith.addf %120, %122 : vector<8x16xf32>
    %cst_74 = arith.constant 0.000000e+00 : f32
    %124 = vector.broadcast %cst_74 : f32 to vector<8x16xf32>
    %125 = arith.maximumf %123, %124 : vector<8x16xf32>
    %c0_75 = arith.constant 0 : index
    %c0_76 = arith.constant 0 : index
    %126 = vector.load %arg24[%c0_75, %c0_76] : memref<8x12xf32, #tpu.memory_space<vmem>>, vector<8x12xf32>
    tpu.vector_store %arg24[%c0_75, %c0_76], %109 {strides = array<i32>} : memref<8x12xf32, #tpu.memory_space<vmem>>, vector<8x12xf32>,
    %c0_77 = arith.constant 0 : index
    %c0_78 = arith.constant 0 : index
    %127 = vector.load %arg25[%c0_77, %c0_78] : memref<8x16xf32, #tpu.memory_space<vmem>>, vector<8x16xf32>
    tpu.vector_store %arg25[%c0_77, %c0_78], %125 {strides = array<i32>} : memref<8x16xf32, #tpu.memory_space<vmem>>, vector<8x16xf32>,
    %c0_79 = arith.constant 0 : index
    %c0_80 = arith.constant 0 : index
    %128 = vector.load %arg18[%c0_79, %c0_80] : memref<8x16xf32, #tpu.memory_space<vmem>>, vector<8x16xf32>
    tpu.vector_store %arg18[%c0_79, %c0_80], %27 {strides = array<i32>} : memref<8x16xf32, #tpu.memory_space<vmem>>, vector<8x16xf32>,
    %c0_81 = arith.constant 0 : index
    %c0_82 = arith.constant 0 : index
    %129 = vector.load %arg19[%c0_81, %c0_82] : memref<8x16xf32, #tpu.memory_space<vmem>>, vector<8x16xf32>
    tpu.vector_store %arg19[%c0_81, %c0_82], %43 {strides = array<i32>} : memref<8x16xf32, #tpu.memory_space<vmem>>, vector<8x16xf32>,
    %c0_83 = arith.constant 0 : index
    %c0_84 = arith.constant 0 : index
    %130 = vector.load %arg20[%c0_83, %c0_84] : memref<8x16xf32, #tpu.memory_space<vmem>>, vector<8x16xf32>
    tpu.vector_store %arg20[%c0_83, %c0_84], %35 {strides = array<i32>} : memref<8x16xf32, #tpu.memory_space<vmem>>, vector<8x16xf32>,
    %c0_85 = arith.constant 0 : index
    %c0_86 = arith.constant 0 : index
    %131 = vector.load %arg21[%c0_85, %c0_86] : memref<8x16xf32, #tpu.memory_space<vmem>>, vector<8x16xf32>
    tpu.vector_store %arg21[%c0_85, %c0_86], %51 {strides = array<i32>} : memref<8x16xf32, #tpu.memory_space<vmem>>, vector<8x16xf32>,
    %c0_87 = arith.constant 0 : index
    %c0_88 = arith.constant 0 : index
    %132 = vector.load %arg22[%c0_87, %c0_88] : memref<8x2xf32, #tpu.memory_space<vmem>>, vector<8x2xf32>
    tpu.vector_store %arg22[%c0_87, %c0_88], %71 {strides = array<i32>} : memref<8x2xf32, #tpu.memory_space<vmem>>, vector<8x2xf32>,
    %c0_89 = arith.constant 0 : index
    %c0_90 = arith.constant 0 : index
    %133 = vector.load %arg23[%c0_89, %c0_90] : memref<8x2xf32, #tpu.memory_space<vmem>>, vector<8x2xf32>
    tpu.vector_store %arg23[%c0_89, %c0_90], %91 {strides = array<i32>} : memref<8x2xf32, #tpu.memory_space<vmem>>, vector<8x2xf32>,
    return
  }
  func.func @transform_0(%arg0: i32) -> (i32, i32) {
    %c0_i32 = arith.constant 0 : i32
    %c0_i32_0 = arith.constant 0 : i32
    return %arg0, %c0_i32 : i32, i32
  }
  func.func @transform_1(%arg0: i32) -> (i32, i32) {
    %c0_i32 = arith.constant 0 : i32
    %c0_i32_0 = arith.constant 0 : i32
    return %arg0, %c0_i32 : i32, i32
  }
  func.func @transform_2(%arg0: i32) -> (i32, i32) {
    %c0_i32 = arith.constant 0 : i32
    %c0_i32_0 = arith.constant 0 : i32
    %c0_i32_1 = arith.constant 0 : i32
    return %c0_i32, %c0_i32_0 : i32, i32
  }
  func.func @transform_3(%arg0: i32) -> (i32, i32) {
    %c0_i32 = arith.constant 0 : i32
    %c0_i32_0 = arith.constant 0 : i32
    %c0_i32_1 = arith.constant 0 : i32
    return %c0_i32, %c0_i32_0 : i32, i32
  }
  func.func @transform_4(%arg0: i32) -> (i32, i32) {
    %c0_i32 = arith.constant 0 : i32
    %c0_i32_0 = arith.constant 0 : i32
    %c0_i32_1 = arith.constant 0 : i32
    return %c0_i32, %c0_i32_0 : i32, i32
  }
  func.func @transform_5(%arg0: i32) -> (i32, i32) {
    %c0_i32 = arith.constant 0 : i32
    %c0_i32_0 = arith.constant 0 : i32
    %c0_i32_1 = arith.constant 0 : i32
    return %c0_i32, %c0_i32_0 : i32, i32
  }
  func.func @transform_6(%arg0: i32) -> (i32, i32) {
    %c0_i32 = arith.constant 0 : i32
    %c0_i32_0 = arith.constant 0 : i32
    %c0_i32_1 = arith.constant 0 : i32
    return %c0_i32, %c0_i32_0 : i32, i32
  }
  func.func @transform_7(%arg0: i32) -> (i32, i32) {
    %c0_i32 = arith.constant 0 : i32
    %c0_i32_0 = arith.constant 0 : i32
    %c0_i32_1 = arith.constant 0 : i32
    return %c0_i32, %c0_i32_0 : i32, i32
  }
  func.func @transform_8(%arg0: i32) -> (i32, i32) {
    %c0_i32 = arith.constant 0 : i32
    %c0_i32_0 = arith.constant 0 : i32
    %c0_i32_1 = arith.constant 0 : i32
    return %c0_i32, %c0_i32_0 : i32, i32
  }
  func.func @transform_9(%arg0: i32) -> (i32, i32) {
    %c0_i32 = arith.constant 0 : i32
    %c0_i32_0 = arith.constant 0 : i32
    %c0_i32_1 = arith.constant 0 : i32
    return %c0_i32, %c0_i32_0 : i32, i32
  }
  func.func @transform_10(%arg0: i32) -> (i32, i32) {
    %c0_i32 = arith.constant 0 : i32
    %c0_i32_0 = arith.constant 0 : i32
    %c0_i32_1 = arith.constant 0 : i32
    return %c0_i32, %c0_i32_0 : i32, i32
  }
  func.func @transform_11(%arg0: i32) -> (i32, i32) {
    %c0_i32 = arith.constant 0 : i32
    %c0_i32_0 = arith.constant 0 : i32
    %c0_i32_1 = arith.constant 0 : i32
    return %c0_i32, %c0_i32_0 : i32, i32
  }
  func.func @transform_12(%arg0: i32) -> (i32, i32) {
    %c0_i32 = arith.constant 0 : i32
    %c0_i32_0 = arith.constant 0 : i32
    %c0_i32_1 = arith.constant 0 : i32
    return %c0_i32, %c0_i32_0 : i32, i32
  }
  func.func @transform_13(%arg0: i32) -> (i32, i32) {
    %c0_i32 = arith.constant 0 : i32
    %c0_i32_0 = arith.constant 0 : i32
    %c0_i32_1 = arith.constant 0 : i32
    return %c0_i32, %c0_i32_0 : i32, i32
  }
  func.func @transform_14(%arg0: i32) -> (i32, i32) {
    %c0_i32 = arith.constant 0 : i32
    %c0_i32_0 = arith.constant 0 : i32
    %c0_i32_1 = arith.constant 0 : i32
    return %c0_i32, %c0_i32_0 : i32, i32
  }
  func.func @transform_15(%arg0: i32) -> (i32, i32) {
    %c0_i32 = arith.constant 0 : i32
    %c0_i32_0 = arith.constant 0 : i32
    %c0_i32_1 = arith.constant 0 : i32
    return %c0_i32, %c0_i32_0 : i32, i32
  }
  func.func @transform_16(%arg0: i32) -> (i32, i32) {
    %c0_i32 = arith.constant 0 : i32
    %c0_i32_0 = arith.constant 0 : i32
    %c0_i32_1 = arith.constant 0 : i32
    return %c0_i32, %c0_i32_0 : i32, i32
  }
  func.func @transform_17(%arg0: i32) -> (i32, i32) {
    %c0_i32 = arith.constant 0 : i32
    %c0_i32_0 = arith.constant 0 : i32
    return %arg0, %c0_i32 : i32, i32
  }
  func.func @transform_18(%arg0: i32) -> (i32, i32) {
    %c0_i32 = arith.constant 0 : i32
    %c0_i32_0 = arith.constant 0 : i32
    return %arg0, %c0_i32 : i32, i32
  }
  func.func @transform_19(%arg0: i32) -> (i32, i32) {
    %c0_i32 = arith.constant 0 : i32
    %c0_i32_0 = arith.constant 0 : i32
    return %arg0, %c0_i32 : i32, i32
  }
  func.func @transform_20(%arg0: i32) -> (i32, i32) {
    %c0_i32 = arith.constant 0 : i32
    %c0_i32_0 = arith.constant 0 : i32
    return %arg0, %c0_i32 : i32, i32
  }
  func.func @transform_21(%arg0: i32) -> (i32, i32) {
    %c0_i32 = arith.constant 0 : i32
    %c0_i32_0 = arith.constant 0 : i32
    return %arg0, %c0_i32 : i32, i32
  }
  func.func @transform_22(%arg0: i32) -> (i32, i32) {
    %c0_i32 = arith.constant 0 : i32
    %c0_i32_0 = arith.constant 0 : i32
    return %arg0, %c0_i32 : i32, i32
  }
  func.func @transform_23(%arg0: i32) -> (i32, i32) {
    %c0_i32 = arith.constant 0 : i32
    %c0_i32_0 = arith.constant 0 : i32
    return %arg0, %c0_i32 : i32, i32
  }
  func.func @transform_24(%arg0: i32) -> (i32, i32) {
    %c0_i32 = arith.constant 0 : i32
    %c0_i32_0 = arith.constant 0 : i32
    return %arg0, %c0_i32 : i32, i32
  }
}

module attributes {stable_mosaic.version = 11 : i64} {
  func.func @kernel(%arg0: i32, %arg1: memref<8x12xbf16, #tpu.memory_space<vmem>>, %arg2: memref<8x16xbf16, #tpu.memory_space<vmem>>, %arg3: memref<12x64xf32, #tpu.memory_space<vmem>>, %arg4: memref<12x64xbf16, #tpu.memory_space<vmem>>, %arg5: memref<16x64xbf16, #tpu.memory_space<vmem>>, %arg6: memref<32x16xbf16, #tpu.memory_space<vmem>>, %arg7: memref<32x16xbf16, #tpu.memory_space<vmem>>, %arg8: memref<32x16xbf16, #tpu.memory_space<vmem>>, %arg9: memref<32x16xbf16, #tpu.memory_space<vmem>>, %arg10: memref<16x8xbf16, #tpu.memory_space<vmem>>, %arg11: memref<8x2xbf16, #tpu.memory_space<vmem>>, %arg12: memref<16x8xbf16, #tpu.memory_space<vmem>>, %arg13: memref<8x2xbf16, #tpu.memory_space<vmem>>, %arg14: memref<16x8xbf16, #tpu.memory_space<vmem>>, %arg15: memref<16x8xbf16, #tpu.memory_space<vmem>>, %arg16: memref<8x16xf32, #tpu.memory_space<vmem>>, %arg17: memref<8x16xf32, #tpu.memory_space<vmem>>, %arg18: memref<8x16xf32, #tpu.memory_space<vmem>>, %arg19: memref<8x16xf32, #tpu.memory_space<vmem>>, %arg20: memref<8x2xf32, #tpu.memory_space<vmem>>, %arg21: memref<8x2xf32, #tpu.memory_space<vmem>>, %arg22: memref<8x1xf32, #tpu.memory_space<vmem>>) attributes {dimension_semantics = [#tpu.dimension_semantics<parallel>], iteration_bounds = array<i64: 1>, scalar_prefetch = 0 : i64, scratch_operands = 0 : i64, tpu.core_type = #tpu.core_type<tc>, window_params = [{transform_indices = @transform_0, window_bounds = array<i64: 8, 12>}, {transform_indices = @transform_1, window_bounds = array<i64: 8, 16>}, {pipeline_mode = #tpu.pipeline_mode<synchronous>, transform_indices = @transform_2, window_bounds = array<i64: 12, 64>}, {pipeline_mode = #tpu.pipeline_mode<synchronous>, transform_indices = @transform_3, window_bounds = array<i64: 12, 64>}, {pipeline_mode = #tpu.pipeline_mode<synchronous>, transform_indices = @transform_4, window_bounds = array<i64: 16, 64>}, {pipeline_mode = #tpu.pipeline_mode<synchronous>, transform_indices = @transform_5, window_bounds = array<i64: 32, 16>}, {pipeline_mode = #tpu.pipeline_mode<synchronous>, transform_indices = @transform_6, window_bounds = array<i64: 32, 16>}, {pipeline_mode = #tpu.pipeline_mode<synchronous>, transform_indices = @transform_7, window_bounds = array<i64: 32, 16>}, {pipeline_mode = #tpu.pipeline_mode<synchronous>, transform_indices = @transform_8, window_bounds = array<i64: 32, 16>}, {pipeline_mode = #tpu.pipeline_mode<synchronous>, transform_indices = @transform_9, window_bounds = array<i64: 16, 8>}, {pipeline_mode = #tpu.pipeline_mode<synchronous>, transform_indices = @transform_10, window_bounds = array<i64: 8, 2>}, {pipeline_mode = #tpu.pipeline_mode<synchronous>, transform_indices = @transform_11, window_bounds = array<i64: 16, 8>}, {pipeline_mode = #tpu.pipeline_mode<synchronous>, transform_indices = @transform_12, window_bounds = array<i64: 8, 2>}, {pipeline_mode = #tpu.pipeline_mode<synchronous>, transform_indices = @transform_13, window_bounds = array<i64: 16, 8>}, {pipeline_mode = #tpu.pipeline_mode<synchronous>, transform_indices = @transform_14, window_bounds = array<i64: 16, 8>}, {transform_indices = @transform_15, window_bounds = array<i64: 8, 16>}, {transform_indices = @transform_16, window_bounds = array<i64: 8, 16>}, {transform_indices = @transform_17, window_bounds = array<i64: 8, 16>}, {transform_indices = @transform_18, window_bounds = array<i64: 8, 16>}, {transform_indices = @transform_19, window_bounds = array<i64: 8, 2>}, {transform_indices = @transform_20, window_bounds = array<i64: 8, 2>}, {transform_indices = @transform_21, window_bounds = array<i64: 8, 1>}]} {
    %c0 = arith.constant 0 : index
    %c0_0 = arith.constant 0 : index
    %0 = vector.load %arg1[%c0, %c0_0] : memref<8x12xbf16, #tpu.memory_space<vmem>>, vector<8x12xbf16>
    %c0_1 = arith.constant 0 : index
    %c0_2 = arith.constant 0 : index
    %1 = vector.load %arg2[%c0_1, %c0_2] : memref<8x16xbf16, #tpu.memory_space<vmem>>, vector<8x16xbf16>
    %c0_3 = arith.constant 0 : index
    %c0_4 = arith.constant 0 : index
    %2 = vector.load %arg4[%c0_3, %c0_4] : memref<12x64xbf16, #tpu.memory_space<vmem>>, vector<12x64xbf16>
    %cst = arith.constant dense<0.000000e+00> : vector<8x64xf32>
    %3 = tpu.matmul %0, %2, %cst {dimension_numbers = #tpu.dot_dimension_numbers<[1], [0], [0], [1], [0, 0, 1, 1], [], []>} : vector<8x12xbf16>, vector<12x64xbf16>, vector<8x64xf32> -> vector<8x64xf32>
    %c0_5 = arith.constant 0 : index
    %c0_6 = arith.constant 0 : index
    %4 = vector.load %arg3[%c0_5, %c0_6] : memref<12x64xf32, #tpu.memory_space<vmem>>, vector<1x64xf32>
    %5 = vector.broadcast %4 : vector<1x64xf32> to vector<8x64xf32>
    %6 = arith.addf %3, %5 : vector<8x64xf32>
    %cst_7 = arith.constant 0.000000e+00 : f32
    %7 = vector.broadcast %cst_7 : f32 to vector<8x64xf32>
    %8 = arith.maximumf %6, %7 : vector<8x64xf32>
    %c0_8 = arith.constant 0 : index
    %c0_9 = arith.constant 0 : index
    %9 = vector.load %arg5[%c0_8, %c0_9] : memref<16x64xbf16, #tpu.memory_space<vmem>>, vector<16x64xbf16>
    %cst_10 = arith.constant dense<0.000000e+00> : vector<8x64xf32>
    %10 = tpu.matmul %1, %9, %cst_10 {dimension_numbers = #tpu.dot_dimension_numbers<[1], [0], [0], [1], [0, 0, 1, 1], [], []>} : vector<8x16xbf16>, vector<16x64xbf16>, vector<8x64xf32> -> vector<8x64xf32>
    %c1 = arith.constant 1 : index
    %c0_11 = arith.constant 0 : index
    %11 = vector.load %arg3[%c1, %c0_11] : memref<12x64xf32, #tpu.memory_space<vmem>>, vector<1x64xf32>
    %12 = vector.broadcast %11 : vector<1x64xf32> to vector<8x64xf32>
    %13 = arith.addf %10, %12 : vector<8x64xf32>
    %cst_12 = arith.constant 0.000000e+00 : f32
    %14 = vector.broadcast %cst_12 : f32 to vector<8x64xf32>
    %15 = arith.maximumf %13, %14 : vector<8x64xf32>
    %16 = vector.extract_strided_slice %8 {offsets = [0, 0], sizes = [8, 32], strides = [1, 1]} : vector<8x64xf32> to vector<8x32xf32>
    %17 = vector.extract_strided_slice %8 {offsets = [0, 32], sizes = [8, 32], strides = [1, 1]} : vector<8x64xf32> to vector<8x32xf32>
    %18 = vector.extract_strided_slice %15 {offsets = [0, 0], sizes = [8, 32], strides = [1, 1]} : vector<8x64xf32> to vector<8x32xf32>
    %19 = vector.extract_strided_slice %15 {offsets = [0, 32], sizes = [8, 32], strides = [1, 1]} : vector<8x64xf32> to vector<8x32xf32>
    %20 = arith.truncf %16 : vector<8x32xf32> to vector<8x32xbf16>
    %c0_13 = arith.constant 0 : index
    %c0_14 = arith.constant 0 : index
    %21 = vector.load %arg6[%c0_13, %c0_14] : memref<32x16xbf16, #tpu.memory_space<vmem>>, vector<32x16xbf16>
    %cst_15 = arith.constant dense<0.000000e+00> : vector<8x16xf32>
    %22 = tpu.matmul %20, %21, %cst_15 {dimension_numbers = #tpu.dot_dimension_numbers<[1], [0], [0], [1], [0, 0, 1, 1], [], []>} : vector<8x32xbf16>, vector<32x16xbf16>, vector<8x16xf32> -> vector<8x16xf32>
    %c2 = arith.constant 2 : index
    %c0_16 = arith.constant 0 : index
    %23 = vector.load %arg3[%c2, %c0_16] : memref<12x64xf32, #tpu.memory_space<vmem>>, vector<1x16xf32>
    %24 = vector.broadcast %23 : vector<1x16xf32> to vector<8x16xf32>
    %25 = arith.addf %22, %24 : vector<8x16xf32>
    %cst_17 = arith.constant 0.000000e+00 : f32
    %26 = vector.broadcast %cst_17 : f32 to vector<8x16xf32>
    %27 = arith.maximumf %25, %26 : vector<8x16xf32>
    %28 = arith.truncf %17 : vector<8x32xf32> to vector<8x32xbf16>
    %c0_18 = arith.constant 0 : index
    %c0_19 = arith.constant 0 : index
    %29 = vector.load %arg7[%c0_18, %c0_19] : memref<32x16xbf16, #tpu.memory_space<vmem>>, vector<32x16xbf16>
    %cst_20 = arith.constant dense<0.000000e+00> : vector<8x16xf32>
    %30 = tpu.matmul %28, %29, %cst_20 {dimension_numbers = #tpu.dot_dimension_numbers<[1], [0], [0], [1], [0, 0, 1, 1], [], []>} : vector<8x32xbf16>, vector<32x16xbf16>, vector<8x16xf32> -> vector<8x16xf32>
    %c3 = arith.constant 3 : index
    %c0_21 = arith.constant 0 : index
    %31 = vector.load %arg3[%c3, %c0_21] : memref<12x64xf32, #tpu.memory_space<vmem>>, vector<1x16xf32>
    %32 = vector.broadcast %31 : vector<1x16xf32> to vector<8x16xf32>
    %33 = arith.addf %30, %32 : vector<8x16xf32>
    %cst_22 = arith.constant 0.000000e+00 : f32
    %34 = vector.broadcast %cst_22 : f32 to vector<8x16xf32>
    %35 = arith.maximumf %33, %34 : vector<8x16xf32>
    %36 = arith.truncf %18 : vector<8x32xf32> to vector<8x32xbf16>
    %c0_23 = arith.constant 0 : index
    %c0_24 = arith.constant 0 : index
    %37 = vector.load %arg8[%c0_23, %c0_24] : memref<32x16xbf16, #tpu.memory_space<vmem>>, vector<32x16xbf16>
    %cst_25 = arith.constant dense<0.000000e+00> : vector<8x16xf32>
    %38 = tpu.matmul %36, %37, %cst_25 {dimension_numbers = #tpu.dot_dimension_numbers<[1], [0], [0], [1], [0, 0, 1, 1], [], []>} : vector<8x32xbf16>, vector<32x16xbf16>, vector<8x16xf32> -> vector<8x16xf32>
    %c4 = arith.constant 4 : index
    %c0_26 = arith.constant 0 : index
    %39 = vector.load %arg3[%c4, %c0_26] : memref<12x64xf32, #tpu.memory_space<vmem>>, vector<1x16xf32>
    %40 = vector.broadcast %39 : vector<1x16xf32> to vector<8x16xf32>
    %41 = arith.addf %38, %40 : vector<8x16xf32>
    %cst_27 = arith.constant 0.000000e+00 : f32
    %42 = vector.broadcast %cst_27 : f32 to vector<8x16xf32>
    %43 = arith.maximumf %41, %42 : vector<8x16xf32>
    %44 = arith.truncf %19 : vector<8x32xf32> to vector<8x32xbf16>
    %c0_28 = arith.constant 0 : index
    %c0_29 = arith.constant 0 : index
    %45 = vector.load %arg9[%c0_28, %c0_29] : memref<32x16xbf16, #tpu.memory_space<vmem>>, vector<32x16xbf16>
    %cst_30 = arith.constant dense<0.000000e+00> : vector<8x16xf32>
    %46 = tpu.matmul %44, %45, %cst_30 {dimension_numbers = #tpu.dot_dimension_numbers<[1], [0], [0], [1], [0, 0, 1, 1], [], []>} : vector<8x32xbf16>, vector<32x16xbf16>, vector<8x16xf32> -> vector<8x16xf32>
    %c5 = arith.constant 5 : index
    %c0_31 = arith.constant 0 : index
    %47 = vector.load %arg3[%c5, %c0_31] : memref<12x64xf32, #tpu.memory_space<vmem>>, vector<1x16xf32>
    %48 = vector.broadcast %47 : vector<1x16xf32> to vector<8x16xf32>
    %49 = arith.addf %46, %48 : vector<8x16xf32>
    %cst_32 = arith.constant 0.000000e+00 : f32
    %50 = vector.broadcast %cst_32 : f32 to vector<8x16xf32>
    %51 = arith.maximumf %49, %50 : vector<8x16xf32>
    %52 = arith.truncf %35 : vector<8x16xf32> to vector<8x16xbf16>
    %c0_33 = arith.constant 0 : index
    %c0_34 = arith.constant 0 : index
    %53 = vector.load %arg10[%c0_33, %c0_34] : memref<16x8xbf16, #tpu.memory_space<vmem>>, vector<16x8xbf16>
    %cst_35 = arith.constant dense<0.000000e+00> : vector<8x8xf32>
    %54 = tpu.matmul %52, %53, %cst_35 {dimension_numbers = #tpu.dot_dimension_numbers<[1], [0], [0], [1], [0, 0, 1, 1], [], []>} : vector<8x16xbf16>, vector<16x8xbf16>, vector<8x8xf32> -> vector<8x8xf32>
    %c6 = arith.constant 6 : index
    %c0_36 = arith.constant 0 : index
    %55 = vector.load %arg3[%c6, %c0_36] : memref<12x64xf32, #tpu.memory_space<vmem>>, vector<1x8xf32>
    %56 = vector.broadcast %55 : vector<1x8xf32> to vector<8x8xf32>
    %57 = arith.addf %54, %56 : vector<8x8xf32>
    %cst_37 = arith.constant 0.000000e+00 : f32
    %58 = vector.broadcast %cst_37 : f32 to vector<8x8xf32>
    %59 = arith.maximumf %57, %58 : vector<8x8xf32>
    %60 = arith.truncf %59 : vector<8x8xf32> to vector<8x8xbf16>
    %c0_38 = arith.constant 0 : index
    %c0_39 = arith.constant 0 : index
    %61 = vector.load %arg11[%c0_38, %c0_39] : memref<8x2xbf16, #tpu.memory_space<vmem>>, vector<8x2xbf16>
    %cst_40 = arith.constant dense<0.000000e+00> : vector<8x2xf32>
    %62 = tpu.matmul %60, %61, %cst_40 {dimension_numbers = #tpu.dot_dimension_numbers<[1], [0], [0], [1], [0, 0, 1, 1], [], []>} : vector<8x8xbf16>, vector<8x2xbf16>, vector<8x2xf32> -> vector<8x2xf32>
    %c7 = arith.constant 7 : index
    %c0_41 = arith.constant 0 : index
    %63 = vector.load %arg3[%c7, %c0_41] : memref<12x64xf32, #tpu.memory_space<vmem>>, vector<1x2xf32>
    %64 = vector.broadcast %63 : vector<1x2xf32> to vector<8x2xf32>
    %65 = arith.addf %62, %64 : vector<8x2xf32>
    %cst_42 = arith.constant 0.000000e+00 : f32
    %66 = vector.broadcast %cst_42 : f32 to vector<8x2xf32>
    %67 = arith.subf %66, %65 : vector<8x2xf32>
    %68 = math.exp %67 : vector<8x2xf32>
    %cst_43 = arith.constant 1.000000e+00 : f32
    %69 = vector.broadcast %cst_43 : f32 to vector<8x2xf32>
    %70 = arith.addf %69, %68 : vector<8x2xf32>
    %71 = tpu.reciprocal %70 {approx = true} : vector<8x2xf32> -> vector<8x2xf32>
    %72 = arith.truncf %51 : vector<8x16xf32> to vector<8x16xbf16>
    %c0_44 = arith.constant 0 : index
    %c0_45 = arith.constant 0 : index
    %73 = vector.load %arg12[%c0_44, %c0_45] : memref<16x8xbf16, #tpu.memory_space<vmem>>, vector<16x8xbf16>
    %cst_46 = arith.constant dense<0.000000e+00> : vector<8x8xf32>
    %74 = tpu.matmul %72, %73, %cst_46 {dimension_numbers = #tpu.dot_dimension_numbers<[1], [0], [0], [1], [0, 0, 1, 1], [], []>} : vector<8x16xbf16>, vector<16x8xbf16>, vector<8x8xf32> -> vector<8x8xf32>
    %c8 = arith.constant 8 : index
    %c0_47 = arith.constant 0 : index
    %75 = vector.load %arg3[%c8, %c0_47] : memref<12x64xf32, #tpu.memory_space<vmem>>, vector<1x8xf32>
    %76 = vector.broadcast %75 : vector<1x8xf32> to vector<8x8xf32>
    %77 = arith.addf %74, %76 : vector<8x8xf32>
    %cst_48 = arith.constant 0.000000e+00 : f32
    %78 = vector.broadcast %cst_48 : f32 to vector<8x8xf32>
    %79 = arith.maximumf %77, %78 : vector<8x8xf32>
    %80 = arith.truncf %79 : vector<8x8xf32> to vector<8x8xbf16>
    %c0_49 = arith.constant 0 : index
    %c0_50 = arith.constant 0 : index
    %81 = vector.load %arg13[%c0_49, %c0_50] : memref<8x2xbf16, #tpu.memory_space<vmem>>, vector<8x2xbf16>
    %cst_51 = arith.constant dense<0.000000e+00> : vector<8x2xf32>
    %82 = tpu.matmul %80, %81, %cst_51 {dimension_numbers = #tpu.dot_dimension_numbers<[1], [0], [0], [1], [0, 0, 1, 1], [], []>} : vector<8x8xbf16>, vector<8x2xbf16>, vector<8x2xf32> -> vector<8x2xf32>
    %c9 = arith.constant 9 : index
    %c0_52 = arith.constant 0 : index
    %83 = vector.load %arg3[%c9, %c0_52] : memref<12x64xf32, #tpu.memory_space<vmem>>, vector<1x2xf32>
    %84 = vector.broadcast %83 : vector<1x2xf32> to vector<8x2xf32>
    %85 = arith.addf %82, %84 : vector<8x2xf32>
    %cst_53 = arith.constant 0.000000e+00 : f32
    %86 = vector.broadcast %cst_53 : f32 to vector<8x2xf32>
    %87 = arith.subf %86, %85 : vector<8x2xf32>
    %88 = math.exp %87 : vector<8x2xf32>
    %cst_54 = arith.constant 1.000000e+00 : f32
    %89 = vector.broadcast %cst_54 : f32 to vector<8x2xf32>
    %90 = arith.addf %89, %88 : vector<8x2xf32>
    %91 = tpu.reciprocal %90 {approx = true} : vector<8x2xf32> -> vector<8x2xf32>
    %92 = arith.addf %35, %27 : vector<8x16xf32>
    %93 = arith.addf %51, %43 : vector<8x16xf32>
    %94 = arith.truncf %92 : vector<8x16xf32> to vector<8x16xbf16>
    %c0_55 = arith.constant 0 : index
    %c0_56 = arith.constant 0 : index
    %95 = vector.load %arg14[%c0_55, %c0_56] : memref<16x8xbf16, #tpu.memory_space<vmem>>, vector<16x8xbf16>
    %cst_57 = arith.constant dense<0.000000e+00> : vector<8x8xf32>
    %96 = tpu.matmul %94, %95, %cst_57 {dimension_numbers = #tpu.dot_dimension_numbers<[1], [0], [0], [1], [0, 0, 1, 1], [], []>} : vector<8x16xbf16>, vector<16x8xbf16>, vector<8x8xf32> -> vector<8x8xf32>
    %c10 = arith.constant 10 : index
    %c0_58 = arith.constant 0 : index
    %97 = vector.load %arg3[%c10, %c0_58] : memref<12x64xf32, #tpu.memory_space<vmem>>, vector<1x8xf32>
    %98 = vector.broadcast %97 : vector<1x8xf32> to vector<8x8xf32>
    %99 = arith.addf %96, %98 : vector<8x8xf32>
    %cst_59 = arith.constant 0.000000e+00 : f32
    %100 = vector.broadcast %cst_59 : f32 to vector<8x8xf32>
    %101 = arith.maximumf %99, %100 : vector<8x8xf32>
    %102 = arith.truncf %93 : vector<8x16xf32> to vector<8x16xbf16>
    %c0_60 = arith.constant 0 : index
    %c0_61 = arith.constant 0 : index
    %103 = vector.load %arg15[%c0_60, %c0_61] : memref<16x8xbf16, #tpu.memory_space<vmem>>, vector<16x8xbf16>
    %cst_62 = arith.constant dense<0.000000e+00> : vector<8x8xf32>
    %104 = tpu.matmul %102, %103, %cst_62 {dimension_numbers = #tpu.dot_dimension_numbers<[1], [0], [0], [1], [0, 0, 1, 1], [], []>} : vector<8x16xbf16>, vector<16x8xbf16>, vector<8x8xf32> -> vector<8x8xf32>
    %c11 = arith.constant 11 : index
    %c0_63 = arith.constant 0 : index
    %105 = vector.load %arg3[%c11, %c0_63] : memref<12x64xf32, #tpu.memory_space<vmem>>, vector<1x8xf32>
    %106 = vector.broadcast %105 : vector<1x8xf32> to vector<8x8xf32>
    %107 = arith.addf %104, %106 : vector<8x8xf32>
    %cst_64 = arith.constant 0.000000e+00 : f32
    %108 = vector.broadcast %cst_64 : f32 to vector<8x8xf32>
    %109 = arith.maximumf %107, %108 : vector<8x8xf32>
    %110 = arith.mulf %101, %109 : vector<8x8xf32>
    %cst_65 = arith.constant dense<0.000000e+00> : vector<8xf32>
    %111 = vector.multi_reduction <add>, %110, %cst_65 [1] : vector<8x8xf32> to vector<8xf32>
    %112 = vector.shape_cast %111 : vector<8xf32> to vector<8x1xf32>
    %c0_66 = arith.constant 0 : index
    %c0_67 = arith.constant 0 : index
    %113 = vector.load %arg22[%c0_66, %c0_67] : memref<8x1xf32, #tpu.memory_space<vmem>>, vector<8x1xf32>
    tpu.vector_store %arg22[%c0_66, %c0_67], %112 {strides = array<i32>} : memref<8x1xf32, #tpu.memory_space<vmem>>, vector<8x1xf32>,
    %c0_68 = arith.constant 0 : index
    %c0_69 = arith.constant 0 : index
    %114 = vector.load %arg16[%c0_68, %c0_69] : memref<8x16xf32, #tpu.memory_space<vmem>>, vector<8x16xf32>
    tpu.vector_store %arg16[%c0_68, %c0_69], %27 {strides = array<i32>} : memref<8x16xf32, #tpu.memory_space<vmem>>, vector<8x16xf32>,
    %c0_70 = arith.constant 0 : index
    %c0_71 = arith.constant 0 : index
    %115 = vector.load %arg17[%c0_70, %c0_71] : memref<8x16xf32, #tpu.memory_space<vmem>>, vector<8x16xf32>
    tpu.vector_store %arg17[%c0_70, %c0_71], %43 {strides = array<i32>} : memref<8x16xf32, #tpu.memory_space<vmem>>, vector<8x16xf32>,
    %c0_72 = arith.constant 0 : index
    %c0_73 = arith.constant 0 : index
    %116 = vector.load %arg18[%c0_72, %c0_73] : memref<8x16xf32, #tpu.memory_space<vmem>>, vector<8x16xf32>
    tpu.vector_store %arg18[%c0_72, %c0_73], %35 {strides = array<i32>} : memref<8x16xf32, #tpu.memory_space<vmem>>, vector<8x16xf32>,
    %c0_74 = arith.constant 0 : index
    %c0_75 = arith.constant 0 : index
    %117 = vector.load %arg19[%c0_74, %c0_75] : memref<8x16xf32, #tpu.memory_space<vmem>>, vector<8x16xf32>
    tpu.vector_store %arg19[%c0_74, %c0_75], %51 {strides = array<i32>} : memref<8x16xf32, #tpu.memory_space<vmem>>, vector<8x16xf32>,
    %c0_76 = arith.constant 0 : index
    %c0_77 = arith.constant 0 : index
    %118 = vector.load %arg20[%c0_76, %c0_77] : memref<8x2xf32, #tpu.memory_space<vmem>>, vector<8x2xf32>
    tpu.vector_store %arg20[%c0_76, %c0_77], %71 {strides = array<i32>} : memref<8x2xf32, #tpu.memory_space<vmem>>, vector<8x2xf32>,
    %c0_78 = arith.constant 0 : index
    %c0_79 = arith.constant 0 : index
    %119 = vector.load %arg21[%c0_78, %c0_79] : memref<8x2xf32, #tpu.memory_space<vmem>>, vector<8x2xf32>
    tpu.vector_store %arg21[%c0_78, %c0_79], %91 {strides = array<i32>} : memref<8x2xf32, #tpu.memory_space<vmem>>, vector<8x2xf32>,
    return
  }
  func.func @transform_0(%arg0: i32) -> (i32, i32) {
    %c0_i32 = arith.constant 0 : i32
    %c0_i32_0 = arith.constant 0 : i32
    return %arg0, %c0_i32 : i32, i32
  }
  func.func @transform_1(%arg0: i32) -> (i32, i32) {
    %c0_i32 = arith.constant 0 : i32
    %c0_i32_0 = arith.constant 0 : i32
    return %arg0, %c0_i32 : i32, i32
  }
  func.func @transform_2(%arg0: i32) -> (i32, i32) {
    %c0_i32 = arith.constant 0 : i32
    %c0_i32_0 = arith.constant 0 : i32
    %c0_i32_1 = arith.constant 0 : i32
    return %c0_i32, %c0_i32_0 : i32, i32
  }
  func.func @transform_3(%arg0: i32) -> (i32, i32) {
    %c0_i32 = arith.constant 0 : i32
    %c0_i32_0 = arith.constant 0 : i32
    %c0_i32_1 = arith.constant 0 : i32
    return %c0_i32, %c0_i32_0 : i32, i32
  }
  func.func @transform_4(%arg0: i32) -> (i32, i32) {
    %c0_i32 = arith.constant 0 : i32
    %c0_i32_0 = arith.constant 0 : i32
    %c0_i32_1 = arith.constant 0 : i32
    return %c0_i32, %c0_i32_0 : i32, i32
  }
  func.func @transform_5(%arg0: i32) -> (i32, i32) {
    %c0_i32 = arith.constant 0 : i32
    %c0_i32_0 = arith.constant 0 : i32
    %c0_i32_1 = arith.constant 0 : i32
    return %c0_i32, %c0_i32_0 : i32, i32
  }
  func.func @transform_6(%arg0: i32) -> (i32, i32) {
    %c0_i32 = arith.constant 0 : i32
    %c0_i32_0 = arith.constant 0 : i32
    %c0_i32_1 = arith.constant 0 : i32
    return %c0_i32, %c0_i32_0 : i32, i32
  }
  func.func @transform_7(%arg0: i32) -> (i32, i32) {
    %c0_i32 = arith.constant 0 : i32
    %c0_i32_0 = arith.constant 0 : i32
    %c0_i32_1 = arith.constant 0 : i32
    return %c0_i32, %c0_i32_0 : i32, i32
  }
  func.func @transform_8(%arg0: i32) -> (i32, i32) {
    %c0_i32 = arith.constant 0 : i32
    %c0_i32_0 = arith.constant 0 : i32
    %c0_i32_1 = arith.constant 0 : i32
    return %c0_i32, %c0_i32_0 : i32, i32
  }
  func.func @transform_9(%arg0: i32) -> (i32, i32) {
    %c0_i32 = arith.constant 0 : i32
    %c0_i32_0 = arith.constant 0 : i32
    %c0_i32_1 = arith.constant 0 : i32
    return %c0_i32, %c0_i32_0 : i32, i32
  }
  func.func @transform_10(%arg0: i32) -> (i32, i32) {
    %c0_i32 = arith.constant 0 : i32
    %c0_i32_0 = arith.constant 0 : i32
    %c0_i32_1 = arith.constant 0 : i32
    return %c0_i32, %c0_i32_0 : i32, i32
  }
  func.func @transform_11(%arg0: i32) -> (i32, i32) {
    %c0_i32 = arith.constant 0 : i32
    %c0_i32_0 = arith.constant 0 : i32
    %c0_i32_1 = arith.constant 0 : i32
    return %c0_i32, %c0_i32_0 : i32, i32
  }
  func.func @transform_12(%arg0: i32) -> (i32, i32) {
    %c0_i32 = arith.constant 0 : i32
    %c0_i32_0 = arith.constant 0 : i32
    %c0_i32_1 = arith.constant 0 : i32
    return %c0_i32, %c0_i32_0 : i32, i32
  }
  func.func @transform_13(%arg0: i32) -> (i32, i32) {
    %c0_i32 = arith.constant 0 : i32
    %c0_i32_0 = arith.constant 0 : i32
    %c0_i32_1 = arith.constant 0 : i32
    return %c0_i32, %c0_i32_0 : i32, i32
  }
  func.func @transform_14(%arg0: i32) -> (i32, i32) {
    %c0_i32 = arith.constant 0 : i32
    %c0_i32_0 = arith.constant 0 : i32
    %c0_i32_1 = arith.constant 0 : i32
    return %c0_i32, %c0_i32_0 : i32, i32
  }
  func.func @transform_15(%arg0: i32) -> (i32, i32) {
    %c0_i32 = arith.constant 0 : i32
    %c0_i32_0 = arith.constant 0 : i32
    return %arg0, %c0_i32 : i32, i32
  }
  func.func @transform_16(%arg0: i32) -> (i32, i32) {
    %c0_i32 = arith.constant 0 : i32
    %c0_i32_0 = arith.constant 0 : i32
    return %arg0, %c0_i32 : i32, i32
  }
  func.func @transform_17(%arg0: i32) -> (i32, i32) {
    %c0_i32 = arith.constant 0 : i32
    %c0_i32_0 = arith.constant 0 : i32
    return %arg0, %c0_i32 : i32, i32
  }
  func.func @transform_18(%arg0: i32) -> (i32, i32) {
    %c0_i32 = arith.constant 0 : i32
    %c0_i32_0 = arith.constant 0 : i32
    return %arg0, %c0_i32 : i32, i32
  }
  func.func @transform_19(%arg0: i32) -> (i32, i32) {
    %c0_i32 = arith.constant 0 : i32
    %c0_i32_0 = arith.constant 0 : i32
    return %arg0, %c0_i32 : i32, i32
  }
  func.func @transform_20(%arg0: i32) -> (i32, i32) {
    %c0_i32 = arith.constant 0 : i32
    %c0_i32_0 = arith.constant 0 : i32
    return %arg0, %c0_i32 : i32, i32
  }
  func.func @transform_21(%arg0: i32) -> (i32, i32) {
    %c0_i32 = arith.constant 0 : i32
    %c0_i32_0 = arith.constant 0 : i32
    return %arg0, %c0_i32 : i32, i32
  }
}

</mosaic_0001>

<bundles_post_ra>
// kernel: run_both.3
= control target key start
LH: loop header
LB: loop body
LE: loop exit
PB: predicated region body
PF: predicated region fallthrough
CT: control target
= control target key end

     0   :  { %vm76_vm0 = vcmask 1045504   ;;  %v1012_v0 = vmov 0.0   ;;  %vm1013_vm1 = vmmov 0   ;;  %vm72_vm2 = vcmask 97280   ;;  %s1014_s23 = smov 96   ;;  %s1301_s3 = inlined_call_operand.vmem [shape: bf16[12,64], index: 3, kind: input, shape index: {}]   ;;  %s1302_s4 = inlined_call_operand.vmem [shape: bf16[16,64], index: 4, kind: input, shape index: {}]   ;;  %s1303_s0 = inlined_call_operand.vmem [shape: bf16[8,12], index: 0, kind: input, shape index: {}]   ;;  %s1304_s1 = inlined_call_operand.vmem [shape: bf16[8,16], index: 1, kind: input, shape index: {}]   ;;  %s1305_s5 = inlined_call_operand.vmem [shape: bf16[32,16], index: 5, kind: input, shape index: {}]   ;;  %s1306_s7 = inlined_call_operand.vmem [shape: bf16[32,16], index: 7, kind: input, shape index: {}]   ;;  %s1307_s6 = inlined_call_operand.vmem [shape: bf16[32,16], index: 6, kind: input, shape index: {}]   ;;  %s1308_s8 = inlined_call_operand.vmem [shape: bf16[32,16], index: 8, kind: input, shape index: {}]   ;;  %s1309_s2 = inlined_call_operand.vmem [shape: f32[12,64], index: 2, kind: input, shape index: {}]   ;;  %s1310_s9 = inlined_call_operand.vmem [shape: bf16[16,8], index: 9, kind: input, shape index: {}]   ;;  %s1311_s11 = inlined_call_operand.vmem [shape: bf16[16,8], index: 11, kind: input, shape index: {}]   ;;  %s1312_s15 = inlined_call_operand.vmem [shape: f32[8,16], index: 15, kind: output, shape index: {0}]   ;;  %s1313_s13 = inlined_call_operand.vmem [shape: bf16[16,8], index: 13, kind: input, shape index: {}]   ;;  %s1314_s16 = inlined_call_operand.vmem [shape: f32[8,16], index: 16, kind: output, shape index: {1}]   ;;  %s1315_s10 = inlined_call_operand.vmem [shape: bf16[8,2], index: 10, kind: input, shape index: {}]   ;;  %s1316_s17 = inlined_call_operand.vmem [shape: f32[8,16], index: 17, kind: output, shape index: {2}]   ;;  %s1317_s18 = inlined_call_operand.vmem [shape: f32[8,16], index: 18, kind: output, shape index: {3}]   ;;  %s1318_s14 = inlined_call_operand.vmem [shape: bf16[16,8], index: 14, kind: input, shape index: {}]   ;;  %s1319_s12 = inlined_call_operand.vmem [shape: bf16[8,2], index: 12, kind: input, shape index: {}]   ;;  %s1320_s19 = inlined_call_operand.vmem [shape: f32[8,2], index: 19, kind: output, shape index: {4}]   ;;  %s1321_s20 = inlined_call_operand.vmem [shape: f32[8,2], index: 20, kind: output, shape index: {5}]   ;;  %s1322_s21 = inlined_call_operand.vmem [shape: f32[8,1], index: 21, kind: output, shape index: {6}]  }
   0x1   :  { %1325 = sst [smem:[#allocation2_spill]] %s1301_s3  ;;  %907 = vmatprep.subr.bf16.mxu0 %v1012_v0  ;;  %909 = vmatprep.mubr.msk.bf16.mxu0 %vm1013_vm1, %v1012_v0  ;;  %vm134_vm3 = vcmask 130048   ;;  %v996_v8 = vld [vmem:[%s1307_s6] sm:$0xff]   ;;  %v997_v9 = vld [vmem:[%s1307_s6 + $0x8] sm:$0xff]   ;;  %vm201_vm4 = vcmask 261120   ;;  %vm517_vm5 = vcmask 1043456  }
   0x2   :  { %1326 = sst [smem:[#allocation3_spill]] %s1302_s4  ;;  %s1331_s26 = sld [smem:[#allocation2_spill]]  ;;  %913 = vmatprep.subr.bf16.mxu1 %v1012_v0  ;;  %915 = vmatprep.mubr.msk.bf16.mxu1 %vm1013_vm1, %v1012_v0  ;;  %v841_v10 = vld [vmem:[%s1309_s2] ss:$0 sm:$0xff]  ;;  %v844_v11 = vld [vmem:[%s1309_s2 + $0x1] ss:$0 sm:$0xff] }
   0x3   :  { %1327 = sst [smem:[#allocation4_spill]] %s1303_s0  ;;  %s1332_s28 = sld [smem:[#allocation3_spill]]  ;;  %v1000_v28 = vld [vmem:[%s1310_s9] sm:$0xff]   ;;  %v999_v31 = vld [vmem:[%s1308_s8 + $0x8] sm:$0xff]   ;;  %vm513_vm6 = vcmask 64512   ;;  %vm810_vm7 = vcmask 15360  }
   0x4   :  { %1328 = sst [smem:[#allocation5_spill]] %s1304_s1  ;;  %v998_v29 = vld [vmem:[%s1308_s8] sm:$0xff]   ;;  %vm804_vm8 = vcmask 7168  }
   0x5   :  { %1329 = sst [smem:[#allocation6_spill]] %s1305_s5  ;;  %s1333_s5 = sld [smem:[#allocation4_spill]]  ;;  %v847_v33 = vld [vmem:[%s1309_s2 + $0x2] ss:$0 sm:$0xff]  ;;  %v855_v40 = vld [vmem:[%s1309_s2 + $0x4] ss:$0 sm:$0xff] }
   0x6   :  { %1330 = sst [smem:[#allocation7_spill]] %s1306_s7  ;;  %s1334_s22 = sld [smem:[#allocation5_spill]]  ;;  %v507_v47 = vld [vmem:[%s1315_s10] sm:$0xf]  ;;  %v859_v58 = vld [vmem:[%s1309_s2 + $0x5] ss:$0 sm:$0xff] }
   0x7   :  { %s1335_s24 = sld [smem:[#allocation6_spill]]  ;;  %v519_v48 = vsel %vm517_vm5, %v507_v47, 0  ;;  %v851_v49 = vld [vmem:[%s1309_s2 + $0x3] ss:$0 sm:$0xff]  ;;  %v876_v47 = vld [vmem:[%s1309_s2 + $0xb] ss:$0 sm:$0xff] }
   0x8   :  { %v990_v1 = vld [vmem:[%s1331_s26] sm:$0x3f]  }
   0x9   :  { %v78_v2 = vsel %vm76_vm0, %v990_v1, 0  ;;  %v991_v3 = vld [vmem:[%s1332_s28] sm:$0xff]  }
   0xa   :  { %908 = vmatpush3.bf16.msra.mxu0 %v78_v2  ;;  %914 = vmatpush3.bf16.msra.mxu1 %v991_v3  ;;  %v1001_v56 = vld [vmem:[%s1311_s11] sm:$0xff]  }
   0xb   :  { %v58_v4 = vld [vmem:[%s1333_s5] sm:$0xf]  ;;  %919 = vmatprep.subr.bf16.mxu0 %v1012_v0  ;;  %927 = vmatprep.subr.bf16.mxu1 %v1012_v0 }
   0xc   :  { %v59_v5 = vld [vmem:[%s1334_s22] sm:$0xf]  ;;  %s1336_s22 = sld [smem:[#allocation7_spill]] }
   0xd   :  { %910 = vmatmul.mubr.msk.bf16.vlgmr.msra.gmra.mrb[0].mxu0 %vm72_vm2, %v58_v4  ;;  %916 = vmatmul.mubr.msk.bf16.vlgmr.msra.gmra.mrb[0].mxu1 %vm134_vm3, %v59_v5  ;;  %v992_v6 = vld [vmem:[%s1335_s24] sm:$0xff]   ;;  %v993_v7 = vld [vmem:[%s1335_s24 + $0x8] sm:$0xff]  }
   0xe   :  { %923 = vmatprep.mubr.msk.bf16.mxu0 %vm1013_vm1, %v1012_v0  ;;  %931 = vmatprep.mubr.msk.bf16.mxu1 %vm1013_vm1, %v1012_v0  ;;  %v1002_v2 = vld [vmem:[%s1313_s13] sm:$0xff]  }
   0xf   :  { %920 = vmatpush3.bf16.msra.mxu0 %v992_v6  ;;  %928 = vmatpush3.bf16.msra.mxu1 %v996_v8  ;;  %v863_v6 = vld [vmem:[%s1309_s2 + $0x6] ss:$0 sm:$0xff] }
  0x10   :  { %921 = vmatprep.subr.bf16.mxu0 %v1012_v0  ;;  %929 = vmatprep.subr.bf16.mxu1 %v1012_v0 }
  0x12   :  { %v994_v24 = vld [vmem:[%s1336_s22] sm:$0xff]   ;;  %v995_v27 = vld [vmem:[%s1336_s22 + $0x8] sm:$0xff]  }
  0x13   :  { %922 = vmatpush3.bf16.msra.mxu0 %v993_v7  ;;  %930 = vmatpush3.bf16.msra.mxu1 %v997_v9 }
  0x14   :  { %935 = vmatprep.subr.bf16.mxu0 %v1012_v0  ;;  %943 = vmatprep.subr.bf16.mxu1 %v1012_v0 }
  0xe0   :  { %v114_v12 = vpop.f32.mrb[0].mxu0  ;;  %v172_v15 = vpop.f32.mrb[0].mxu1 }
  0xe1   :  { %v115_v13 = vadd.f32 %v841_v10, %v114_v12  ;;  %v911_v14 = vpop.f32.mrb[1].mxu0  ;;  %v173_v17 = vadd.f32 %v844_v11, %v172_v15  ;;  %v917_v18 = vpop.f32.mrb[1].mxu1  ;;  %v625_v11 = vld [vmem:[%s1319_s12] sm:$0xf] }
  0xe2   :  { %v117_v16 = vpop.f32.mrb[2].mxu0  ;;  %v175_v21 = vpop.f32.mrb[2].mxu1  ;;  %v635_v15 = vsel %vm517_vm5, %v625_v11, 0 }
  0xe3   :  { %v120_v19 = vmax.f32 %v115_v13, 0.0  ;;  %v912_v20 = vpop.f32.mrb[3].mxu0  ;;  %v178_v22 = vmax.f32 %v173_v17, 0.0  ;;  %v918_v23 = vpop.f32.mrb[3].mxu1  ;;  %v868_v16 = vld [vmem:[%s1309_s2 + $0x8] ss:$0 sm:$0xff] }
  0xe4   :  { %v1003_v23 = vld [vmem:[%s1318_s14] sm:$0xff]  }
  0xe5   :  { %v179_v25 = vpack.c.bf16 %v120_v19, %v120_v19  ;;  %v314_v26 = vpack.c.bf16 %v178_v22, %v178_v22 }
  0xe7   :  { %256 = vrot.lane.b32.xlu0 %v179_v25, %s1014_s23  ;;  %924 = vmatmul.mubr.msk.bf16.vlgmr.msra.gmra.mrb[4].mxu0 %vm201_vm4, %v179_v25 }
  0xe8   :  { %936 = vmatpush3.bf16.msra.mxu0 %v994_v24  ;;  %939 = vmatprep.mubr.msk.bf16.mxu0 %vm1013_vm1, %v1012_v0 }
  0xe9   :  { %937 = vmatprep.subr.bf16.mxu0 %v1012_v0 }
  0xeb   :  { %390 = vrot.lane.b32.xlu0 %v314_v26, %s1014_s23 }
  0xec   :  { %938 = vmatpush3.bf16.msra.mxu0 %v995_v27 }
  0xed   :  { %951 = vmatprep.subr.bf16.mxu0 %v1012_v0 }
  0xef   :  { %940 = vmatmul.mubr.msk.bf16.vlgmr.msra.gmra.mrb[8].mxu0 %vm201_vm4, %v314_v26 }
  0xf0   :  { %953 = vmatprep.mubr.msk.bf16.mxu0 %vm1013_vm1, %v1012_v0  ;;  %952 = vmatpush3.bf16.msra.mxu0 %v1000_v28 }
  0xf1   :  { %963 = vmatprep.subr.bf16.mxu0 %v1012_v0 }
 0x159   :  { %v257_v30 = vpop.permute.xlu0 %256 }
 0x15a   :  { %932 = vmatmul.mubr.msk.bf16.vlgmr.msra.gmra.mrb[4].mxu1 %vm201_vm4, %v257_v30 }
 0x15b   :  { %944 = vmatpush3.bf16.msra.mxu1 %v998_v29  ;;  %947 = vmatprep.mubr.msk.bf16.mxu1 %vm1013_vm1, %v1012_v0 }
 0x15c   :  { %945 = vmatprep.subr.bf16.mxu1 %v1012_v0 }
 0x15d   :  { %v391_v32 = vpop.permute.xlu0 %390 }
 0x15f   :  { %946 = vmatpush3.bf16.msra.mxu1 %v999_v31  ;;  %v866_v31 = vld [vmem:[%s1309_s2 + $0x7] ss:$0 sm:$0xff] }
 0x160   :  { %957 = vmatprep.subr.bf16.mxu1 %v1012_v0 }
 0x162   :  { %948 = vmatmul.mubr.msk.bf16.vlgmr.msra.gmra.mrb[8].mxu1 %vm201_vm4, %v391_v32 }
 0x163   :  { %959 = vmatprep.mubr.msk.bf16.mxu1 %vm1013_vm1, %v1012_v0  ;;  %958 = vmatpush3.bf16.msra.mxu1 %v519_v48 }
 0x164   :  { %969 = vmatprep.subr.bf16.mxu1 %v1012_v0 }
 0x1ba   :  { %v239_v34 = vpop.f32.mrb[4].mxu0 }
 0x1bb   :  { %v240_v35 = vadd.f32 %v847_v33, %v239_v34  ;;  %v925_v36 = vpop.f32.mrb[5].mxu0 }
 0x1bc   :  { %v242_v37 = vpop.f32.mrb[6].mxu0 }
 0x1bd   :  { %v245_v38 = vmax.f32 %v240_v35, 0.0  ;;  %v926_v39 = vpop.f32.mrb[7].mxu0 }
 0x1bf   :  { %806 = vst.msk [vmem:[%s1312_s15] sm:$0xff] %vm134_vm3, %v245_v38 }
 0x1c2   :  { %v373_v41 = vpop.f32.mrb[8].mxu0 }
 0x1c3   :  { %v1214_v42 = vadd.f32 %v855_v40, %v373_v41  ;;  %v941_v43 = vpop.f32.mrb[9].mxu0 }
 0x1c4   :  { %v376_v44 = vpop.f32.mrb[10].mxu0 }
 0x1c5   :  { %v379_v45 = vmax.f32 %v1214_v42, 0.0  ;;  %v942_v46 = vpop.f32.mrb[11].mxu0 }
 0x1c7   :  { %807 = vst.msk [vmem:[%s1314_s16] sm:$0xff] %vm134_vm3, %v379_v45 }
 0x22d   :  { %v307_v50 = vpop.f32.mrb[4].mxu1 }
 0x22e   :  { %v308_v51 = vadd.f32 %v851_v49, %v307_v50  ;;  %v933_v52 = vpop.f32.mrb[5].mxu1 }
 0x22f   :  { %v310_v53 = vpop.f32.mrb[6].mxu1 }
 0x230   :  { %v313_v54 = vmax.f32 %v308_v51, 0.0  ;;  %v934_v55 = vpop.f32.mrb[7].mxu1 }
 0x232   :  { %v448_v57 = vpack.c.bf16 %v313_v54, %v313_v54  ;;  %808 = vst.msk [vmem:[%s1316_s17] sm:$0xff] %vm134_vm3, %v313_v54  ;;  %v682_v4 = vadd.f32 %v313_v54, %v245_v38  ;;  %v871_v38 = vld [vmem:[%s1309_s2 + $0x9] ss:$0 sm:$0xff] }
 0x234   :  { %954 = vmatmul.mubr.msk.bf16.vlgmr.msra.gmra.mrb[12].mxu0 %vm134_vm3, %v448_v57  ;;  %v684_v5 = vpack.c.bf16 %v682_v4, %v682_v4 }
 0x235   :  { %964 = vmatpush3.bf16.msra.mxu0 %v1001_v56  ;;  %v441_v59 = vpop.f32.mrb[8].mxu1  ;;  %965 = vmatprep.mubr.msk.bf16.mxu0 %vm1013_vm1, %v1012_v0 }
 0x236   :  { %v442_v60 = vadd.f32 %v859_v58, %v441_v59  ;;  %v949_v61 = vpop.f32.mrb[9].mxu1  ;;  %975 = vmatprep.subr.bf16.mxu0 %v1012_v0 }
 0x237   :  { %v444_v62 = vpop.f32.mrb[10].mxu1 }
 0x238   :  { %v447_v63 = vmax.f32 %v442_v60, 0.0  ;;  %v950_v1 = vpop.f32.mrb[11].mxu1 }
 0x23a   :  { %v566_v3 = vpack.c.bf16 %v447_v63, %v447_v63  ;;  %809 = vst.msk [vmem:[%s1317_s18] sm:$0xff] %vm134_vm3, %v447_v63  ;;  %v683_v26 = vadd.f32 %v447_v63, %v379_v45  ;;  %v873_v45 = vld [vmem:[%s1309_s2 + $0xa] ss:$0 sm:$0xff] }
 0x23c   :  { %966 = vmatmul.mubr.msk.bf16.vlgmr.msra.gmra.mrb[16].mxu0 %vm134_vm3, %v566_v3  ;;  %v742_v30 = vpack.c.bf16 %v683_v26, %v683_v26 }
 0x23d   :  { %976 = vmatpush3.bf16.msra.mxu0 %v1002_v2  ;;  %977 = vmatprep.mubr.msk.bf16.mxu0 %vm1013_vm1, %v1012_v0 }
 0x244   :  { %978 = vmatmul.mubr.msk.bf16.vlgmr.msra.gmra.mrb[20].mxu0 %vm134_vm3, %v684_v5 }
 0x307   :  { %v499_v7 = vpop.f32.mrb[12].mxu0 }
 0x308   :  { %v500_v8 = vadd.f32 %v863_v6, %v499_v7  ;;  %v955_v9 = vpop.f32.mrb[13].mxu0 }
 0x309   :  { %v502_v10 = vpop.f32.mrb[14].mxu0 }
 0x30a   :  { %v505_v12 = vmax.f32 %v500_v8, 0.0  ;;  %v956_v13 = vpop.f32.mrb[15].mxu0 }
 0x30c   :  { %v506_v14 = vpack.c.bf16 %v505_v12, %v505_v12 }
 0x30e   :  { %960 = vmatmul.mubr.msk.bf16.vlgmr.msra.gmra.mrb[12].mxu1 %vm513_vm6, %v506_v14 }
 0x30f   :  { %970 = vmatpush3.bf16.msra.mxu1 %v635_v15  ;;  %v617_v17 = vpop.f32.mrb[16].mxu0  ;;  %971 = vmatprep.mubr.msk.bf16.mxu1 %vm1013_vm1, %v1012_v0 }
 0x310   :  { %v618_v18 = vadd.f32 %v868_v16, %v617_v17  ;;  %v967_v19 = vpop.f32.mrb[17].mxu0  ;;  %981 = vmatprep.subr.bf16.mxu1 %v1012_v0 }
 0x311   :  { %v620_v20 = vpop.f32.mrb[18].mxu0 }
 0x312   :  { %v623_v21 = vmax.f32 %v618_v18, 0.0  ;;  %v968_v22 = vpop.f32.mrb[19].mxu0 }
 0x314   :  { %v624_v24 = vpack.c.bf16 %v623_v21, %v623_v21 }
 0x316   :  { %972 = vmatmul.mubr.msk.bf16.vlgmr.msra.gmra.mrb[16].mxu1 %vm513_vm6, %v624_v24 }
 0x317   :  { %982 = vmatpush3.bf16.msra.mxu1 %v1003_v23  ;;  %v735_v25 = vpop.f32.mrb[20].mxu0  ;;  %983 = vmatprep.mubr.msk.bf16.mxu1 %vm1013_vm1, %v1012_v0 }
 0x318   :  { %v979_v27 = vpop.f32.mrb[21].mxu0  ;;  %v736_v48 = vadd.f32 %v873_v45, %v735_v25 }
 0x319   :  { %v738_v28 = vpop.f32.mrb[22].mxu0 }
 0x31a   :  { %v980_v29 = vpop.f32.mrb[23].mxu0  ;;  %v741_v55 = vmax.f32 %v736_v48, 0.0 }
 0x31e   :  { %984 = vmatmul.mubr.msk.bf16.vlgmr.msra.gmra.mrb[20].mxu1 %vm134_vm3, %v742_v30 }
 0x3e1   :  { %v555_v32 = vpop.f32.mrb[12].mxu1 }
 0x3e2   :  { %v556_v33 = vadd.f32 %v866_v31, %v555_v32  ;;  %v961_v34 = vpop.f32.mrb[13].mxu1 }
 0x3e3   :  { %v558_v35 = vpop.f32.mrb[14].mxu1 }
 0x3e4   :  { %v561_v36 = vsub.f32 0.0, %v556_v33  ;;  %v962_v37 = vpop.f32.mrb[15].mxu1 }
 0x3e6   :  { %v562_v0 = vmul.f32 1.442695, %v561_v36 }
 0x3e8   :  { %1004 = vpow2.f32 %v562_v0 }
 0x3e9   :  { %v671_v39 = vpop.f32.mrb[16].mxu1 }
 0x3ea   :  { %v672_v40 = vadd.f32 %v871_v38, %v671_v39  ;;  %v973_v41 = vpop.f32.mrb[17].mxu1 }
 0x3eb   :  { %v674_v42 = vpop.f32.mrb[18].mxu1 }
 0x3ec   :  { %v677_v43 = vsub.f32 0.0, %v672_v40  ;;  %v974_v44 = vpop.f32.mrb[19].mxu1 }
 0x3ee   :  { %v678_v46 = vmul.f32 1.442695, %v677_v43 }
 0x3f0   :  { %1006 = vpow2.f32 %v678_v46 }
 0x3f1   :  { %v793_v49 = vpop.f32.mrb[20].mxu1 }
 0x3f2   :  { %v1005_v50 = vpop.eup %1004  ;;  %v794_v51 = vadd.f32 %v876_v47, %v793_v49  ;;  %v985_v52 = vpop.f32.mrb[21].mxu1 }
 0x3f3   :  { %v564_v53 = vadd.f32 1.0, %v1005_v50  ;;  %v796_v54 = vpop.f32.mrb[22].mxu1 }
 0x3f4   :  { %v799_v56 = vmax.f32 %v794_v51, 0.0  ;;  %v986_v57 = vpop.f32.mrb[23].mxu1 }
 0x3f5   :  { %1008 = vrcp.f32 %v564_v53 }
 0x3f6   :  { %v800_v58 = vmul.f32 %v799_v56, %v741_v55 }
 0x3f8   :  { %v801_v59 = vsel %vm513_vm6, %v800_v58, 0.0 }
 0x3f9   :  { %802 = vadd.xlane.f32.xlu1 %v801_v59 }
 0x3fa   :  { %v1007_v60 = vpop.eup %1006 }
 0x3fb   :  { %v680_v61 = vadd.f32 1.0, %v1007_v60 }
 0x3fd   :  { %1010 = vrcp.f32 %v680_v61 }
 0x3ff   :  { %v1009_v62 = vpop.eup %1008 }
 0x400   :  { %811 = vst.msk [vmem:[%s1320_s19] sm:$0xff] %vm810_vm7, %v1009_v62 }
 0x407   :  { %v1011_v63 = vpop.eup %1010 }
 0x408   :  { %812 = vst.msk [vmem:[%s1321_s20] sm:$0xff] %vm810_vm7, %v1011_v63 }
 0x486   :  { %v803_v1 = vpop.xlane.xlu1 %802 }
 0x487   :  { %805 = vst.msk [vmem:[%s1322_s21] sm:$0xff] %vm804_vm8, %v803_v1 }

// kernel: run_both.2
= control target key start
LH: loop header
LB: loop body
LE: loop exit
PB: predicated region body
PF: predicated region fallthrough
CT: control target
= control target key end

     0   :  { %vm83_vm0 = vcmask 1045504   ;;  %v1185_v0 = vmov 0.0   ;;  %vm1186_vm1 = vmmov 0   ;;  %vm79_vm2 = vcmask 97280   ;;  %s1515_s3 = inlined_call_operand.vmem [shape: bf16[12,64], index: 3, kind: input, shape index: {}]   ;;  %s1516_s4 = inlined_call_operand.vmem [shape: bf16[16,64], index: 4, kind: input, shape index: {}]   ;;  %s1517_s0 = inlined_call_operand.vmem [shape: bf16[8,12], index: 0, kind: input, shape index: {}]   ;;  %s1518_s1 = inlined_call_operand.vmem [shape: bf16[8,16], index: 1, kind: input, shape index: {}]   ;;  %s1519_s5 = inlined_call_operand.vmem [shape: bf16[32,16], index: 5, kind: input, shape index: {}]   ;;  %s1520_s7 = inlined_call_operand.vmem [shape: bf16[32,16], index: 7, kind: input, shape index: {}]   ;;  %s1521_s6 = inlined_call_operand.vmem [shape: bf16[32,16], index: 6, kind: input, shape index: {}]   ;;  %s1522_s8 = inlined_call_operand.vmem [shape: bf16[32,16], index: 8, kind: input, shape index: {}]   ;;  %s1523_s2 = inlined_call_operand.vmem [shape: f32[14,64], index: 2, kind: input, shape index: {}]   ;;  %s1524_s9 = inlined_call_operand.vmem [shape: bf16[16,8], index: 9, kind: input, shape index: {}]   ;;  %s1525_s11 = inlined_call_operand.vmem [shape: bf16[16,8], index: 11, kind: input, shape index: {}]   ;;  %s1526_s17 = inlined_call_operand.vmem [shape: f32[8,16], index: 17, kind: output, shape index: {0}]   ;;  %s1527_s13 = inlined_call_operand.vmem [shape: bf16[16,32], index: 13, kind: input, shape index: {}]   ;;  %s1528_s18 = inlined_call_operand.vmem [shape: f32[8,16], index: 18, kind: output, shape index: {1}]   ;;  %s1529_s15 = inlined_call_operand.vmem [shape: bf16[16,32], index: 15, kind: input, shape index: {}]   ;;  %s1530_s10 = inlined_call_operand.vmem [shape: bf16[8,2], index: 10, kind: input, shape index: {}]   ;;  %s1531_s19 = inlined_call_operand.vmem [shape: f32[8,16], index: 19, kind: output, shape index: {2}]   ;;  %s1532_s20 = inlined_call_operand.vmem [shape: f32[8,16], index: 20, kind: output, shape index: {3}]   ;;  %s1533_s14 = inlined_call_operand.vmem [shape: bf16[32,12], index: 14, kind: input, shape index: {}]   ;;  %s1534_s16 = inlined_call_operand.vmem [shape: bf16[32,16], index: 16, kind: input, shape index: {}]   ;;  %s1535_s12 = inlined_call_operand.vmem [shape: bf16[8,2], index: 12, kind: input, shape index: {}]   ;;  %s1536_s23 = inlined_call_operand.vmem [shape: f32[8,12], index: 23, kind: output, shape index: {6}]   ;;  %s1537_s24 = inlined_call_operand.vmem [shape: f32[8,16], index: 24, kind: output, shape index: {7}]   ;;  %s1538_s21 = inlined_call_operand.vmem [shape: f32[8,2], index: 21, kind: output, shape index: {4}]   ;;  %s1539_s22 = inlined_call_operand.vmem [shape: f32[8,2], index: 22, kind: output, shape index: {5}]  }
   0x1   :  { %1545 = sst [smem:[#allocation2_spill]] %s1515_s3  ;;  %1060 = vmatprep.subr.bf16.mxu0 %v1185_v0  ;;  %1062 = vmatprep.mubr.msk.bf16.mxu0 %vm1186_vm1, %v1185_v0  ;;  %vm141_vm3 = vcmask 130048   ;;  %vm208_vm4 = vcmask 261120   ;;  %v1169_v28 = vld [vmem:[%s1524_s9] sm:$0xff]   ;;  %vm524_vm5 = vcmask 1043456   ;;  %vm520_vm6 = vcmask 64512  }
   0x2   :  { %1546 = sst [smem:[#allocation3_spill]] %s1516_s4  ;;  %s1554_s27 = sld [smem:[#allocation2_spill]]  ;;  %1066 = vmatprep.subr.bf16.mxu1 %v1185_v0  ;;  %1068 = vmatprep.mubr.msk.bf16.mxu1 %vm1186_vm1, %v1185_v0  ;;  %v514_v47 = vld [vmem:[%s1530_s10] sm:$0xf]  ;;  %vm945_vm7 = vcmask 15360  }
   0x3   :  { %1547 = sst [smem:[#allocation4_spill]] %s1517_s0  ;;  %s1555_s0 = sld [smem:[#allocation3_spill]]  ;;  %v526_v48 = vsel %vm524_vm5, %v514_v47, 0  ;;  %v1170_v56 = vld [vmem:[%s1525_s11] sm:$0xff]  }
   0x4   :  { %1548 = sst [smem:[#allocation5_spill]] %s1518_s1 }
   0x5   :  { %1549 = sst [smem:[#allocation6_spill]] %s1519_s5  ;;  %s1557_s3 = sld [smem:[#allocation5_spill]] }
   0x6   :  { %1550 = sst [smem:[#allocation7_spill]] %s1520_s7  ;;  %s1558_s4 = sld [smem:[#allocation6_spill]] }
   0x7   :  { %1551 = sst [smem:[#allocation8_spill]] %s1521_s6  ;;  %s1187_s7 = smov 96  }
   0x8   :  { %1552 = sst [smem:[#allocation9_spill]] %s1522_s8  ;;  %v1159_v1 = vld [vmem:[%s1554_s27] sm:$0x3f]   ;;  %s1556_s8 = sld [smem:[#allocation4_spill]] }
   0x9   :  { %1553 = sst [smem:[#allocation10_spill]] %s1523_s2  ;;  %v85_v2 = vsel %vm83_vm0, %v1159_v1, 0  ;;  %v1160_v3 = vld [vmem:[%s1555_s0] sm:$0xff]   ;;  %s1559_s6 = sld [smem:[#allocation8_spill]] }
   0xa   :  { %1061 = vmatpush3.bf16.msra.mxu0 %v85_v2  ;;  %1067 = vmatpush3.bf16.msra.mxu1 %v1160_v3  ;;  %s1560_s30 = sld [smem:[#allocation10_spill]]  ;;  %s1562_s1 = sld [smem:[#allocation9_spill]]  ;;  %v1171_v2 = vld [vmem:[%s1527_s13] sm:$0xff]  }
   0xb   :  { %v66_v5 = vld [vmem:[%s1557_s3] sm:$0xf]  ;;  %1072 = vmatprep.subr.bf16.mxu0 %v1185_v0  ;;  %1080 = vmatprep.subr.bf16.mxu1 %v1185_v0 }
   0xc   :  { %v1161_v6 = vld [vmem:[%s1558_s4] sm:$0xff]   ;;  %v1162_v7 = vld [vmem:[%s1558_s4 + $0x8] sm:$0xff]   ;;  %s1561_s4 = sld [smem:[#allocation7_spill]] }
   0xd   :  { %1069 = vmatmul.mubr.msk.bf16.vlgmr.msra.gmra.mrb[0].mxu1 %vm141_vm3, %v66_v5  ;;  %v1172_v5 = vld [vmem:[%s1529_s15] sm:$0xff]  }
   0xe   :  { %v65_v4 = vld [vmem:[%s1556_s8] sm:$0xf]  ;;  %1084 = vmatprep.mubr.msk.bf16.mxu1 %vm1186_vm1, %v1185_v0 }
   0xf   :  { %1063 = vmatmul.mubr.msk.bf16.vlgmr.msra.gmra.mrb[0].mxu0 %vm79_vm2, %v65_v4  ;;  %v1165_v8 = vld [vmem:[%s1559_s6] sm:$0xff]   ;;  %v1166_v9 = vld [vmem:[%s1559_s6 + $0x8] sm:$0xff]  }
  0x10   :  { %1076 = vmatprep.mubr.msk.bf16.mxu0 %vm1186_vm1, %v1185_v0  ;;  %1073 = vmatpush3.bf16.msra.mxu0 %v1161_v6  ;;  %v980_v10 = vld [vmem:[%s1560_s30] ss:$0 sm:$0xff]  ;;  %v983_v11 = vld [vmem:[%s1560_s30 + $0x1] ss:$0 sm:$0xff]  ;;  %v1168_v31 = vld [vmem:[%s1562_s1 + $0x8] sm:$0xff]  }
  0x11   :  { %1074 = vmatprep.subr.bf16.mxu0 %v1185_v0  ;;  %1081 = vmatpush3.bf16.msra.mxu1 %v1165_v8  ;;  %v1167_v29 = vld [vmem:[%s1562_s1] sm:$0xff]  }
  0x12   :  { %1082 = vmatprep.subr.bf16.mxu1 %v1185_v0  ;;  %v1163_v24 = vld [vmem:[%s1561_s4] sm:$0xff]   ;;  %v1164_v27 = vld [vmem:[%s1561_s4 + $0x8] sm:$0xff]  }
  0x13   :  { %v986_v33 = vld [vmem:[%s1560_s30 + $0x2] ss:$0 sm:$0xff]  ;;  %v994_v40 = vld [vmem:[%s1560_s30 + $0x4] ss:$0 sm:$0xff]  ;;  %v990_v49 = vld [vmem:[%s1560_s30 + $0x3] ss:$0 sm:$0xff] }
  0x14   :  { %1075 = vmatpush3.bf16.msra.mxu0 %v1162_v7  ;;  %v998_v58 = vld [vmem:[%s1560_s30 + $0x5] ss:$0 sm:$0xff]  ;;  %v1005_v47 = vld [vmem:[%s1560_s30 + $0x7] ss:$0 sm:$0xff] }
  0x15   :  { %1088 = vmatprep.subr.bf16.mxu0 %v1185_v0  ;;  %1083 = vmatpush3.bf16.msra.mxu1 %v1166_v9  ;;  %v1002_v9 = vld [vmem:[%s1560_s30 + $0x6] ss:$0 sm:$0xff] }
  0x16   :  { %1096 = vmatprep.subr.bf16.mxu1 %v1185_v0 }
  0xe0   :  { %v179_v15 = vpop.f32.mrb[0].mxu1 }
  0xe1   :  { %v180_v17 = vadd.f32 %v983_v11, %v179_v15  ;;  %v1070_v18 = vpop.f32.mrb[1].mxu1 }
  0xe2   :  { %v121_v12 = vpop.f32.mrb[0].mxu0  ;;  %v182_v21 = vpop.f32.mrb[2].mxu1 }
  0xe3   :  { %v122_v13 = vadd.f32 %v980_v10, %v121_v12  ;;  %v1064_v14 = vpop.f32.mrb[1].mxu0  ;;  %v185_v22 = vmax.f32 %v180_v17, 0.0  ;;  %v1071_v23 = vpop.f32.mrb[3].mxu1 }
  0xe4   :  { %v124_v16 = vpop.f32.mrb[2].mxu0  ;;  %v632_v14 = vld [vmem:[%s1535_s12] sm:$0xf] }
  0xe5   :  { %v127_v19 = vmax.f32 %v122_v13, 0.0  ;;  %v1065_v20 = vpop.f32.mrb[3].mxu0  ;;  %v321_v26 = vpack.c.bf16 %v185_v22, %v185_v22  ;;  %v642_v18 = vsel %vm524_vm5, %v632_v14, 0 }
  0xe7   :  { %v186_v25 = vpack.c.bf16 %v127_v19, %v127_v19  ;;  %v1007_v19 = vld [vmem:[%s1560_s30 + $0x8] ss:$0 sm:$0xff] }
  0xe9   :  { %263 = vrot.lane.b32.xlu0 %v186_v25, %s1187_s7  ;;  %1077 = vmatmul.mubr.msk.bf16.vlgmr.msra.gmra.mrb[4].mxu0 %vm208_vm4, %v186_v25 }
  0xea   :  { %1089 = vmatpush3.bf16.msra.mxu0 %v1163_v24  ;;  %1092 = vmatprep.mubr.msk.bf16.mxu0 %vm1186_vm1, %v1185_v0 }
  0xeb   :  { %1090 = vmatprep.subr.bf16.mxu0 %v1185_v0 }
  0xed   :  { %397 = vrot.lane.b32.xlu0 %v321_v26, %s1187_s7 }
  0xee   :  { %1091 = vmatpush3.bf16.msra.mxu0 %v1164_v27 }
  0xef   :  { %1104 = vmatprep.subr.bf16.mxu0 %v1185_v0 }
  0xf1   :  { %1093 = vmatmul.mubr.msk.bf16.vlgmr.msra.gmra.mrb[8].mxu0 %vm208_vm4, %v321_v26  ;;  %v1173_v26 = vld [vmem:[%s1533_s14] sm:$0xff]  }
  0xf2   :  { %1106 = vmatprep.mubr.msk.bf16.mxu0 %vm1186_vm1, %v1185_v0  ;;  %1105 = vmatpush3.bf16.msra.mxu0 %v1169_v28  ;;  %v1012_v28 = vld [vmem:[%s1560_s30 + $0xa] ss:$0 sm:$0xff] }
  0xf3   :  { %1116 = vmatprep.subr.bf16.mxu0 %v1185_v0 }
 0x15b   :  { %v264_v30 = vpop.permute.xlu0 %263 }
 0x15c   :  { %1085 = vmatmul.mubr.msk.bf16.vlgmr.msra.gmra.mrb[4].mxu1 %vm208_vm4, %v264_v30  ;;  %v1174_v30 = vld [vmem:[%s1533_s14 + $0x8] sm:$0xff]  }
 0x15d   :  { %1097 = vmatpush3.bf16.msra.mxu1 %v1167_v29  ;;  %1100 = vmatprep.mubr.msk.bf16.mxu1 %vm1186_vm1, %v1185_v0 }
 0x15e   :  { %1098 = vmatprep.subr.bf16.mxu1 %v1185_v0 }
 0x15f   :  { %v398_v32 = vpop.permute.xlu0 %397 }
 0x161   :  { %1099 = vmatpush3.bf16.msra.mxu1 %v1168_v31 }
 0x162   :  { %1110 = vmatprep.subr.bf16.mxu1 %v1185_v0 }
 0x164   :  { %1101 = vmatmul.mubr.msk.bf16.vlgmr.msra.gmra.mrb[8].mxu1 %vm208_vm4, %v398_v32 }
 0x165   :  { %1112 = vmatprep.mubr.msk.bf16.mxu1 %vm1186_vm1, %v1185_v0  ;;  %1111 = vmatpush3.bf16.msra.mxu1 %v526_v48 }
 0x166   :  { %1122 = vmatprep.subr.bf16.mxu1 %v1185_v0 }
 0x1bc   :  { %v246_v34 = vpop.f32.mrb[4].mxu0 }
 0x1bd   :  { %v247_v35 = vadd.f32 %v986_v33, %v246_v34  ;;  %v1078_v36 = vpop.f32.mrb[5].mxu0 }
 0x1be   :  { %v249_v37 = vpop.f32.mrb[6].mxu0  ;;  %v1175_v36 = vld [vmem:[%s1534_s16] sm:$0xff]  }
 0x1bf   :  { %v252_v38 = vmax.f32 %v247_v35, 0.0  ;;  %v1079_v39 = vpop.f32.mrb[7].mxu0 }
 0x1c1   :  { %941 = vst.msk [vmem:[%s1526_s17] sm:$0xff] %vm141_vm3, %v252_v38 }
 0x1c4   :  { %v380_v41 = vpop.f32.mrb[8].mxu0 }
 0x1c5   :  { %v381_v42 = vadd.f32 %v994_v40, %v380_v41  ;;  %v1094_v43 = vpop.f32.mrb[9].mxu0  ;;  %v1176_v40 = vld [vmem:[%s1534_s16 + $0x8] sm:$0xff]  }
 0x1c6   :  { %v383_v44 = vpop.f32.mrb[10].mxu0 }
 0x1c7   :  { %v386_v45 = vmax.f32 %v381_v42, 0.0  ;;  %v1095_v46 = vpop.f32.mrb[11].mxu0 }
 0x1c9   :  { %942 = vst.msk [vmem:[%s1528_s18] sm:$0xff] %vm141_vm3, %v386_v45 }
 0x22f   :  { %v314_v50 = vpop.f32.mrb[4].mxu1 }
 0x230   :  { %v315_v51 = vadd.f32 %v990_v49, %v314_v50  ;;  %v1086_v52 = vpop.f32.mrb[5].mxu1 }
 0x231   :  { %v317_v53 = vpop.f32.mrb[6].mxu1 }
 0x232   :  { %v320_v54 = vmax.f32 %v315_v51, 0.0  ;;  %v1087_v55 = vpop.f32.mrb[7].mxu1 }
 0x234   :  { %v455_v57 = vpack.c.bf16 %v320_v54, %v320_v54  ;;  %943 = vst.msk [vmem:[%s1531_s19] sm:$0xff] %vm141_vm3, %v320_v54  ;;  %v689_v4 = vadd.f32 %v320_v54, %v252_v38  ;;  %v1019_v38 = vld [vmem:[%s1560_s30 + $0xc] ss:$0 sm:$0xff] }
 0x236   :  { %1107 = vmatmul.mubr.msk.bf16.vlgmr.msra.gmra.mrb[12].mxu0 %vm141_vm3, %v455_v57  ;;  %v691_v6 = vpack.c.bf16 %v689_v4, %v689_v4 }
 0x237   :  { %1117 = vmatpush3.bf16.msra.mxu0 %v1170_v56  ;;  %v448_v59 = vpop.f32.mrb[8].mxu1  ;;  %1118 = vmatprep.mubr.msk.bf16.mxu0 %vm1186_vm1, %v1185_v0 }
 0x238   :  { %v449_v60 = vadd.f32 %v998_v58, %v448_v59  ;;  %v1102_v61 = vpop.f32.mrb[9].mxu1  ;;  %1128 = vmatprep.subr.bf16.mxu0 %v1185_v0 }
 0x239   :  { %v451_v62 = vpop.f32.mrb[10].mxu1 }
 0x23a   :  { %v454_v63 = vmax.f32 %v449_v60, 0.0  ;;  %v1103_v1 = vpop.f32.mrb[11].mxu1  ;;  %v1015_v62 = vld [vmem:[%s1560_s30 + $0xb] ss:$0 sm:$0xff] }
 0x23c   :  { %v573_v3 = vpack.c.bf16 %v454_v63, %v454_v63  ;;  %944 = vst.msk [vmem:[%s1532_s20] sm:$0xff] %vm141_vm3, %v454_v63  ;;  %v690_v7 = vadd.f32 %v454_v63, %v386_v45 }
 0x23e   :  { %1119 = vmatmul.mubr.msk.bf16.vlgmr.msra.gmra.mrb[16].mxu0 %vm141_vm3, %v573_v3  ;;  %v815_v8 = vpack.c.bf16 %v690_v7, %v690_v7 }
 0x23f   :  { %1129 = vmatpush3.bf16.msra.mxu0 %v1171_v2  ;;  %1130 = vmatprep.mubr.msk.bf16.mxu0 %vm1186_vm1, %v1185_v0 }
 0x240   :  { %1142 = vmatprep.subr.bf16.mxu0 %v1185_v0 }
 0x246   :  { %1131 = vmatmul.mubr.msk.bf16.vlgmr.msra.gmra.mrb[20].mxu0 %vm141_vm3, %v691_v6 }
 0x247   :  { %1143 = vmatpush3.bf16.msra.mxu0 %v1172_v5  ;;  %1144 = vmatprep.mubr.msk.bf16.mxu0 %vm1186_vm1, %v1185_v0 }
 0x24e   :  { %1145 = vmatmul.mubr.msk.bf16.vlgmr.msra.gmra.mrb[24].mxu0 %vm141_vm3, %v815_v8  ;;  %v1022_v8 = vld [vmem:[%s1560_s30 + $0xd] ss:$0 sm:$0xff] }
 0x309   :  { %v506_v10 = vpop.f32.mrb[12].mxu0 }
 0x30a   :  { %v507_v11 = vadd.f32 %v1002_v9, %v506_v10  ;;  %v1108_v12 = vpop.f32.mrb[13].mxu0 }
 0x30b   :  { %v509_v13 = vpop.f32.mrb[14].mxu0 }
 0x30c   :  { %v512_v15 = vmax.f32 %v507_v11, 0.0  ;;  %v1109_v16 = vpop.f32.mrb[15].mxu0 }
 0x30e   :  { %v513_v17 = vpack.c.bf16 %v512_v15, %v512_v15 }
 0x310   :  { %1113 = vmatmul.mubr.msk.bf16.vlgmr.msra.gmra.mrb[12].mxu1 %vm520_vm6, %v513_v17 }
 0x311   :  { %1123 = vmatpush3.bf16.msra.mxu1 %v642_v18  ;;  %v624_v20 = vpop.f32.mrb[16].mxu0  ;;  %1124 = vmatprep.mubr.msk.bf16.mxu1 %vm1186_vm1, %v1185_v0 }
 0x312   :  { %v625_v21 = vadd.f32 %v1007_v19, %v624_v20  ;;  %v1120_v22 = vpop.f32.mrb[17].mxu0  ;;  %1134 = vmatprep.subr.bf16.mxu1 %v1185_v0 }
 0x313   :  { %v627_v23 = vpop.f32.mrb[18].mxu0 }
 0x314   :  { %v630_v24 = vmax.f32 %v625_v21, 0.0  ;;  %v1121_v25 = vpop.f32.mrb[19].mxu0 }
 0x316   :  { %v631_v27 = vpack.c.bf16 %v630_v24, %v630_v24 }
 0x318   :  { %1125 = vmatmul.mubr.msk.bf16.vlgmr.msra.gmra.mrb[16].mxu1 %vm520_vm6, %v631_v27 }
 0x319   :  { %v742_v29 = vpop.f32.mrb[20].mxu0  ;;  %1135 = vmatpush3.bf16.msra.mxu1 %v1173_v26  ;;  %1138 = vmatprep.mubr.msk.bf16.mxu1 %vm1186_vm1, %v1185_v0 }
 0x31a   :  { %v743_v31 = vadd.f32 %v1012_v28, %v742_v29  ;;  %v1132_v32 = vpop.f32.mrb[21].mxu0  ;;  %1136 = vmatprep.subr.bf16.mxu1 %v1185_v0 }
 0x31b   :  { %v745_v33 = vpop.f32.mrb[22].mxu0 }
 0x31c   :  { %v748_v34 = vmax.f32 %v743_v31, 0.0  ;;  %v1133_v35 = vpop.f32.mrb[23].mxu0 }
 0x31d   :  { %1137 = vmatpush3.bf16.msra.mxu1 %v1174_v30 }
 0x31e   :  { %v749_v37 = vpack.c.bf16 %v748_v34, %v748_v34  ;;  %1148 = vmatprep.subr.bf16.mxu1 %v1185_v0 }
 0x320   :  { %1139 = vmatmul.mubr.msk.bf16.vlgmr.msra.gmra.mrb[20].mxu1 %vm208_vm4, %v749_v37 }
 0x321   :  { %v866_v39 = vpop.f32.mrb[24].mxu0  ;;  %1149 = vmatpush3.bf16.msra.mxu1 %v1175_v36  ;;  %1152 = vmatprep.mubr.msk.bf16.mxu1 %vm1186_vm1, %v1185_v0 }
 0x322   :  { %v867_v41 = vadd.f32 %v1019_v38, %v866_v39  ;;  %v1146_v42 = vpop.f32.mrb[25].mxu0  ;;  %1150 = vmatprep.subr.bf16.mxu1 %v1185_v0  ;;  %v1010_v0 = vld [vmem:[%s1560_s30 + $0x9] ss:$0 sm:$0xff] }
 0x323   :  { %v869_v43 = vpop.f32.mrb[26].mxu0 }
 0x324   :  { %v872_v44 = vmax.f32 %v867_v41, 0.0  ;;  %v1147_v45 = vpop.f32.mrb[27].mxu0 }
 0x325   :  { %1151 = vmatpush3.bf16.msra.mxu1 %v1176_v40 }
 0x326   :  { %v873_v46 = vpack.c.bf16 %v872_v44, %v872_v44 }
 0x328   :  { %1153 = vmatmul.mubr.msk.bf16.vlgmr.msra.gmra.mrb[24].mxu1 %vm208_vm4, %v873_v46 }
 0x3e3   :  { %v562_v48 = vpop.f32.mrb[12].mxu1 }
 0x3e4   :  { %v563_v49 = vadd.f32 %v1005_v47, %v562_v48  ;;  %v1114_v50 = vpop.f32.mrb[13].mxu1 }
 0x3e5   :  { %v565_v51 = vpop.f32.mrb[14].mxu1 }
 0x3e6   :  { %v568_v52 = vsub.f32 0.0, %v563_v49  ;;  %v1115_v53 = vpop.f32.mrb[15].mxu1 }
 0x3e8   :  { %v569_v54 = vmul.f32 1.442695, %v568_v52 }
 0x3ea   :  { %1177 = vpow2.f32 %v569_v54 }
 0x3eb   :  { %v678_v55 = vpop.f32.mrb[16].mxu1 }
 0x3ec   :  { %v679_v56 = vadd.f32 %v1010_v0, %v678_v55  ;;  %v1126_v57 = vpop.f32.mrb[17].mxu1 }
 0x3ed   :  { %v681_v58 = vpop.f32.mrb[18].mxu1 }
 0x3ee   :  { %v684_v59 = vsub.f32 0.0, %v679_v56  ;;  %v1127_v60 = vpop.f32.mrb[19].mxu1 }
 0x3f0   :  { %v685_v61 = vmul.f32 1.442695, %v684_v59 }
 0x3f2   :  { %1179 = vpow2.f32 %v685_v61 }
 0x3f3   :  { %v808_v63 = vpop.f32.mrb[20].mxu1 }
 0x3f4   :  { %v1178_v1 = vpop.eup %1177  ;;  %v809_v2 = vadd.f32 %v1015_v62, %v808_v63  ;;  %v1140_v3 = vpop.f32.mrb[21].mxu1 }
 0x3f5   :  { %v571_v4 = vadd.f32 1.0, %v1178_v1  ;;  %v811_v5 = vpop.f32.mrb[22].mxu1 }
 0x3f6   :  { %v814_v6 = vmax.f32 %v809_v2, 0.0  ;;  %v1141_v7 = vpop.f32.mrb[23].mxu1 }
 0x3f7   :  { %1181 = vrcp.f32 %v571_v4 }
 0x3f8   :  { %939 = vst.msk [vmem:[%s1536_s23] sm:$0xff] %vm79_vm2, %v814_v6 }
 0x3fb   :  { %v932_v9 = vpop.f32.mrb[24].mxu1 }
 0x3fc   :  { %v1180_v10 = vpop.eup %1179  ;;  %v933_v11 = vadd.f32 %v1022_v8, %v932_v9  ;;  %v1154_v12 = vpop.f32.mrb[25].mxu1 }
 0x3fd   :  { %v687_v13 = vadd.f32 1.0, %v1180_v10  ;;  %v935_v14 = vpop.f32.mrb[26].mxu1 }
 0x3fe   :  { %v938_v15 = vmax.f32 %v933_v11, 0.0  ;;  %v1155_v16 = vpop.f32.mrb[27].mxu1 }
 0x3ff   :  { %1183 = vrcp.f32 %v687_v13 }
 0x400   :  { %940 = vst.msk [vmem:[%s1537_s24] sm:$0xff] %vm141_vm3, %v938_v15 }
 0x401   :  { %v1182_v17 = vpop.eup %1181 }
 0x402   :  { %946 = vst.msk [vmem:[%s1538_s21] sm:$0xff] %vm945_vm7, %v1182_v17 }
 0x409   :  { %v1184_v18 = vpop.eup %1183 }
 0x40a   :  { %947 = vst.msk [vmem:[%s1539_s22] sm:$0xff] %vm945_vm7, %v1184_v18 }

</bundles_post_ra>
